<compile_context>
chip_gen: v7x
topology: tpu7x:2x2x1
jax: 0.10.0
libtpu: 0.0.40
codegen_flags: <defaults>
</compile_context>

<pallas_src>
import jax
import jax.numpy as jnp
from jax.experimental import pallas as pl
from jax.experimental.pallas import tpu as pltpu


def _round_up(x, m):
    return (x + m - 1) // m * m


# ------------------------------- Pallas kernels -------------------------------

def _make_conv_stage_kernel(cout, lp, wp, padl, *, fuse_bn, residual):
    """3x3 'same' conv on the flat-padded layout + fused partial BN stats.

    Optionally fuses the previous stage's epilogue (BN affine + ReLU
    [+ residual + ReLU]) into the activation load.

    Refs (in order):
      x_ref     : (1, Cin, LE)   flat-padded activation (raw prev conv output)
      res_ref   : (1, Cin, LE)   [only if residual] residual in the same layout
      scale_ref : (Cin, 1)       [only if fuse_bn] previous-BN scale
      shift_ref : (Cin, 1)       [only if fuse_bn] previous-BN shift
      w_ref     : (9, Cout, Cin) per-tap weight matrices (tap k = dy*3 + dx)
      mask_ref  : (1, LE)        1.0 at valid interior pixels, 0.0 elsewhere
      y_ref     : (1, Cout, LE)  raw conv output (margins left untouched)
      sum_ref   : (1, Cout, 1)   per-channel partial sum   (this image)
      ssq_ref   : (1, Cout, 1)   per-channel partial sum^2 (this image)
    """
    # Lane offset of tap (dy, dx) relative to the start of the extended buffer.
    taps = [padl + (dy - 1) * wp + (dx - 1) for dy in range(3) for dx in range(3)]

    def kernel(*refs):
        if fuse_bn:
            if residual:
                (x_ref, res_ref, scale_ref, shift_ref, w_ref, mask_ref,
                 y_ref, sum_ref, ssq_ref) = refs
            else:
                (x_ref, scale_ref, shift_ref, w_ref, mask_ref,
                 y_ref, sum_ref, ssq_ref) = refs
            # Fused epilogue of the previous stage: BN affine + ReLU (+ residual).
            z = jnp.maximum(x_ref[0] * scale_ref[...] + shift_ref[...], 0.0)
            if residual:
                z = jnp.maximum(z + res_ref[0], 0.0)
            # Re-zero the pad ring and spare margin lanes: emulates the conv's
            # zero padding and neutralises stale data in never-written lanes.
            z = jnp.where(mask_ref[...] > 0.0, z, 0.0)
        else:
            x_ref, w_ref, mask_ref, y_ref, sum_ref, ssq_ref = refs
            z = x_ref[0]                       # input is already zero-padded

        acc = jnp.zeros((cout, lp), jnp.float32)
        # 9 accumulated MXU matmuls; tap views are in-VMEM lane slices
        # (no HBM duplication).
        for k, off in enumerate(taps):
            acc = acc + jnp.dot(w_ref[k], z[:, off:off + lp],
                                preferred_element_type=jnp.float32)
        y = acc * mask_ref[:, padl:padl + lp]  # zero the ring -> exact BN stats
        sum_ref[0] = jnp.sum(y, axis=1, keepdims=True)
        ssq_ref[0] = jnp.sum(y * y, axis=1, keepdims=True)
        y_ref[0, :, padl:padl + lp] = y        # lane-aligned, lane-dense store

    return kernel


def _make_final_bn_relu_kernel(lp, padl):
    """out = relu(y*scale + shift) over the compact lp window (lane-dense)."""
    def kernel(y_ref, scale_ref, shift_ref, o_ref):
        y = y_ref[0, :, padl:padl + lp]
        o_ref[0] = jnp.maximum(y * scale_ref[...] + shift_ref[...], 0.0)
    return kernel


# ------------------------------- stage wrappers ---------------------------------

def _conv_stage(kernel, inputs, in_specs, *, N, cout, LE, cp):
    return pl.pallas_call(
        kernel,
        grid=(N,),
        in_specs=in_specs,
        out_specs=[
            pl.BlockSpec((1, cout, LE), lambda n: (n, 0, 0)),
            pl.BlockSpec((1, cout, 1), lambda n: (n, 0, 0)),
            pl.BlockSpec((1, cout, 1), lambda n: (n, 0, 0)),
        ],
        out_shape=[
            jax.ShapeDtypeStruct((N, cout, LE), jnp.float32),
            jax.ShapeDtypeStruct((N, cout, 1), jnp.float32),
            jax.ShapeDtypeStruct((N, cout, 1), jnp.float32),
        ],
        compiler_params=cp,
    )(*inputs)


def _bn_affine(s1, s2, gamma, beta, count, eps):
    """Per-channel BN affine (scale, shift) from per-image partial sums."""
    mean = jnp.sum(s1, axis=(0, 2)) / count
    ex2 = jnp.sum(s2, axis=(0, 2)) / count
    var = ex2 - mean * mean                    # biased var (PyTorch BN, training)
    scale = gamma * jax.lax.rsqrt(var + eps)
    shift = beta - mean * scale
    return scale[:, None], shift[:, None]


def _tapify(w_oihw):
    """(O, I, 3, 3) -> (9, O, I); tap k = dy*3 + dx."""
    o, i = w_oihw.shape[0], w_oihw.shape[1]
    return jnp.transpose(w_oihw, (2, 3, 0, 1)).reshape(9, o, i)


# ------------------------------- block forward ---------------------------------

def block_forward(x_nchw, params, eps=1e-5):
    """Forward pass of the PyTorch `Block` module.  Input/output are NCHW."""
    N, c_in, H, W = x_nchw.shape
    c_out = params["w3"].shape[0]
    hp, wp = H + 2, W + 2
    lp = hp * wp
    padl = _round_up(wp + 1, 128)              # lane-aligned halo margin
    LE = lp + 2 * padl

    # Flat-padded, extended input (single cheap XLA pad; no im2col).
    xp = jnp.pad(x_nchw, ((0, 0), (0, 0), (1, 1), (1, 1)))
    x_ext = jnp.pad(xp.reshape(N, c_in, lp), ((0, 0), (0, 0), (padl, padl)))

    # Validity mask (constant under jit): 1 at interior pixels, 0 at ring/margins.
    j = jnp.arange(lp, dtype=jnp.int32)
    yy, xx = j // wp, j % wp
    valid = ((yy >= 1) & (yy <= H) & (xx >= 1) & (xx <= W)).astype(jnp.float32)
    mask_ext = jnp.pad(valid, (padl, padl)).reshape(1, LE)

    cp = pltpu.CompilerParams(dimension_semantics=("parallel",),
                              vmem_limit_bytes=32 * 1024 * 1024)
    count = float(N * H * W)

    act = lambda c: pl.BlockSpec((1, c, LE), lambda n: (n, 0, 0))
    vec = lambda c: pl.BlockSpec((c, 1), lambda n: (0, 0))
    wsp = lambda o, i: pl.BlockSpec((9, o, i), lambda n: (0, 0, 0))
    msp = pl.BlockSpec((1, LE), lambda n: (0, 0))

    # Stage 1: Conv_1 (+ BN_1 stats).  Its BN/ReLU epilogue is fused into stage 2.
    k1 = _make_conv_stage_kernel(c_in, lp, wp, padl, fuse_bn=False, residual=False)
    y1, s1, q1 = _conv_stage(
        k1, (x_ext, _tapify(params["w1"]), mask_ext),
        [act(c_in), wsp(c_in, c_in), msp], N=N, cout=c_in, LE=LE, cp=cp)
    sc1, sh1 = _bn_affine(s1, q1, params["g1"], params["be1"], count, eps)

    # Stage 2: [BN_1 + ReLU] fused -> Conv_2 (+ BN_2 stats).
    k2 = _make_conv_stage_kernel(c_in, lp, wp, padl, fuse_bn=True, residual=False)
    y2, s2, q2 = _conv_stage(
        k2, (y1, sc1, sh1, _tapify(params["w2"]), mask_ext),
        [act(c_in), vec(c_in), vec(c_in), wsp(c_in, c_in), msp],
        N=N, cout=c_in, LE=LE, cp=cp)
    sc2, sh2 = _bn_affine(s2, q2, params["g2"], params["be2"], count, eps)

    # Stage 3: [BN_2 + ReLU + residual + ReLU] fused -> Conv_3 (+ BN_3 stats).
    k3 = _make_conv_stage_kernel(c_out, lp, wp, padl, fuse_bn=True, residual=True)
    y3, s3, q3 = _conv_stage(
        k3, (y2, x_ext, sc2, sh2, _tapify(params["w3"]), mask_ext),
        [act(c_in), act(c_in), vec(c_in), vec(c_in), wsp(c_out, c_in), msp],
        N=N, cout=c_out, LE=LE, cp=cp)
    sc3, sh3 = _bn_affine(s3, q3, params["g3"], params["be3"], count, eps)

    # Stage 4: BN_3 + ReLU -> compact lane-dense output (N, Cout, lp).
    kf = _make_final_bn_relu_kernel(lp, padl)
    out_lp = pl.pallas_call(
        kf,
        grid=(N,),
        in_specs=[act(c_out), vec(c_out), vec(c_out)],
        out_specs=pl.BlockSpec((1, c_out, lp), lambda n: (n, 0, 0)),
        out_shape=jax.ShapeDtypeStruct((N, c_out, lp), jnp.float32),
        compiler_params=cp,
    )(y3, sc3, sh3)

    # Strip the (H+2, W+2) pad ring -> (N, Cout, H, W).
    return out_lp.reshape(N, c_out, hp, wp)[:, :, 1:-1, 1:-1]


# ------------------------------- params & reference ----------------------------

def init_block_params(key, c_in, c_out):
    """Deterministic PyTorch-default-style init (uniform +/- 1/sqrt(fan_in))."""
    def conv_init(k, cout, cin):
        kw, kb = jax.random.split(k)
        bound = 1.0 / jnp.sqrt(float(cin * 9))
        w = jax.random.uniform(kw, (cout, cin, 3, 3), jnp.float32, -bound, bound)
        b = jax.random.uniform(kb, (cout,), jnp.float32, -bound, bound)
        return w, b

    k1, k2, k3 = jax.random.split(key, 3)
    w1, b1 = conv_init(k1, c_in, c_in)
    w2, b2 = conv_init(k2, c_in, c_in)
    w3, b3 = conv_init(k3, c_out, c_in)
    return dict(
        w1=w1, b1=b1, g1=jnp.ones((c_in,), jnp.float32), be1=jnp.zeros((c_in,), jnp.float32),
        w2=w2, b2=b2, g2=jnp.ones((c_in,), jnp.float32), be2=jnp.zeros((c_in,), jnp.float32),
        w3=w3, b3=b3, g3=jnp.ones((c_out,), jnp.float32), be3=jnp.zeros((c_out,), jnp.float32),
    )


def block_forward_ref(x_nchw, p):
    """Pure-JAX (XLA) reference — includes the conv bias, which training-mode
    BatchNorm cancels, verifying the bias-free Pallas path."""
    def conv(x, w, b):
        y = jax.lax.conv_general_dilated(
            x, w, (1, 1), "SAME", dimension_numbers=("NCHW", "OIHW", "NCHW"))
        return y + b[None, :, None, None]

    def bn_relu(x, g, be):
        mean = jnp.mean(x, axis=(0, 2, 3), keepdims=True)
        var = jnp.mean((x - mean) ** 2, axis=(0, 2, 3), keepdims=True)
        y = (x - mean) * jax.lax.rsqrt(var + 1e-5)
        y = y * g[None, :, None, None] + be[None, :, None, None]
        return jnp.maximum(y, 0.0)

    h = bn_relu(conv(x_nchw, p["w1"], p["b1"]), p["g1"], p["be1"])
    h = bn_relu(conv(h, p["w2"], p["b2"]), p["g2"], p["be2"])
    h = jnp.maximum(h + x_nchw, 0.0)
    h = bn_relu(conv(h, p["w3"], p["b3"]), p["g3"], p["be3"])
    return h


# ------------------------------- main -------------------------------------------

if __name__ == "__main__":
    N, C_IN, C_OUT, H, W = 2, 4, 8, 16, 16

    key = jax.random.PRNGKey(0)
    kx, kp = jax.random.split(key)
    x = jax.random.normal(kx, (N, C_IN, H, W), jnp.float32)
    params = init_block_params(kp, C_IN, C_OUT)

    out = jax.jit(block_forward)(x, params)
    out = jax.block_until_ready(out)

    ref = block_forward_ref(x, params)
    assert out.shape == (N, C_OUT, H, W)
    max_err = float(jnp.max(jnp.abs(out - ref)))
    if max_err < 1e-3:
        print("KERNEL_OK")
    else:
        print(f"MISMATCH max_abs_err={max_err}")
</pallas_src>

<mosaic_0001>
module attributes {stable_mosaic.version = 11 : i64} {
  func.func @kernel(%arg0: i32, %arg1: memref<1x4x580xf32, #tpu.memory_space<vmem>>, %arg2: memref<9x4x4xf32, #tpu.memory_space<vmem>>, %arg3: memref<1x580xf32, #tpu.memory_space<vmem>>, %arg4: memref<1x4x580xf32, #tpu.memory_space<vmem>>, %arg5: memref<1x4x1xf32, #tpu.memory_space<vmem>>, %arg6: memref<1x4x1xf32, #tpu.memory_space<vmem>>) attributes {dimension_semantics = [#tpu.dimension_semantics<parallel>], iteration_bounds = array<i64: 2>, scalar_prefetch = 0 : i64, scratch_operands = 0 : i64, tpu.core_type = #tpu.core_type<tc>, window_params = [{transform_indices = @transform_0, window_bounds = array<i64: 1, 4, 580>}, {pipeline_mode = #tpu.pipeline_mode<synchronous>, transform_indices = @transform_1, window_bounds = array<i64: 9, 4, 4>}, {pipeline_mode = #tpu.pipeline_mode<synchronous>, transform_indices = @transform_2, window_bounds = array<i64: 1, 580>}, {transform_indices = @transform_3, window_bounds = array<i64: 1, 4, 580>}, {transform_indices = @transform_4, window_bounds = array<i64: 1, 4, 1>}, {transform_indices = @transform_5, window_bounds = array<i64: 1, 4, 1>}]} {
    %c0 = arith.constant 0 : index
    %c0_0 = arith.constant 0 : index
    %c0_1 = arith.constant 0 : index
    %0 = vector.load %arg1[%c0, %c0_0, %c0_1] : memref<1x4x580xf32, #tpu.memory_space<vmem>>, vector<1x4x580xf32>
    %1 = vector.shape_cast %0 : vector<1x4x580xf32> to vector<4x580xf32>
    %cst = arith.constant 0.000000e+00 : f32
    %2 = vector.broadcast %cst : f32 to vector<4x324xf32>
    %c0_2 = arith.constant 0 : index
    %c0_3 = arith.constant 0 : index
    %c0_4 = arith.constant 0 : index
    %3 = vector.load %arg2[%c0_2, %c0_3, %c0_4] : memref<9x4x4xf32, #tpu.memory_space<vmem>>, vector<1x4x4xf32>
    %4 = vector.shape_cast %3 : vector<1x4x4xf32> to vector<4x4xf32>
    %5 = vector.extract_strided_slice %1 {offsets = [0, 109], sizes = [4, 324], strides = [1, 1]} : vector<4x580xf32> to vector<4x324xf32>
    %cst_5 = arith.constant dense<0.000000e+00> : vector<4x324xf32>
    %6 = tpu.matmul %4, %5, %cst_5 {dimension_numbers = #tpu.dot_dimension_numbers<[1], [0], [0], [1], [0, 0, 1, 1], [], []>} : vector<4x4xf32>, vector<4x324xf32>, vector<4x324xf32> -> vector<4x324xf32>
    %7 = arith.addf %2, %6 : vector<4x324xf32>
    %c1 = arith.constant 1 : index
    %c0_6 = arith.constant 0 : index
    %c0_7 = arith.constant 0 : index
    %8 = vector.load %arg2[%c1, %c0_6, %c0_7] : memref<9x4x4xf32, #tpu.memory_space<vmem>>, vector<1x4x4xf32>
    %9 = vector.shape_cast %8 : vector<1x4x4xf32> to vector<4x4xf32>
    %10 = vector.extract_strided_slice %1 {offsets = [0, 110], sizes = [4, 324], strides = [1, 1]} : vector<4x580xf32> to vector<4x324xf32>
    %cst_8 = arith.constant dense<0.000000e+00> : vector<4x324xf32>
    %11 = tpu.matmul %9, %10, %cst_8 {dimension_numbers = #tpu.dot_dimension_numbers<[1], [0], [0], [1], [0, 0, 1, 1], [], []>} : vector<4x4xf32>, vector<4x324xf32>, vector<4x324xf32> -> vector<4x324xf32>
    %12 = arith.addf %7, %11 : vector<4x324xf32>
    %c2 = arith.constant 2 : index
    %c0_9 = arith.constant 0 : index
    %c0_10 = arith.constant 0 : index
    %13 = vector.load %arg2[%c2, %c0_9, %c0_10] : memref<9x4x4xf32, #tpu.memory_space<vmem>>, vector<1x4x4xf32>
    %14 = vector.shape_cast %13 : vector<1x4x4xf32> to vector<4x4xf32>
    %15 = vector.extract_strided_slice %1 {offsets = [0, 111], sizes = [4, 324], strides = [1, 1]} : vector<4x580xf32> to vector<4x324xf32>
    %cst_11 = arith.constant dense<0.000000e+00> : vector<4x324xf32>
    %16 = tpu.matmul %14, %15, %cst_11 {dimension_numbers = #tpu.dot_dimension_numbers<[1], [0], [0], [1], [0, 0, 1, 1], [], []>} : vector<4x4xf32>, vector<4x324xf32>, vector<4x324xf32> -> vector<4x324xf32>
    %17 = arith.addf %12, %16 : vector<4x324xf32>
    %c3 = arith.constant 3 : index
    %c0_12 = arith.constant 0 : index
    %c0_13 = arith.constant 0 : index
    %18 = vector.load %arg2[%c3, %c0_12, %c0_13] : memref<9x4x4xf32, #tpu.memory_space<vmem>>, vector<1x4x4xf32>
    %19 = vector.shape_cast %18 : vector<1x4x4xf32> to vector<4x4xf32>
    %20 = vector.extract_strided_slice %1 {offsets = [0, 127], sizes = [4, 324], strides = [1, 1]} : vector<4x580xf32> to vector<4x324xf32>
    %cst_14 = arith.constant dense<0.000000e+00> : vector<4x324xf32>
    %21 = tpu.matmul %19, %20, %cst_14 {dimension_numbers = #tpu.dot_dimension_numbers<[1], [0], [0], [1], [0, 0, 1, 1], [], []>} : vector<4x4xf32>, vector<4x324xf32>, vector<4x324xf32> -> vector<4x324xf32>
    %22 = arith.addf %17, %21 : vector<4x324xf32>
    %c4 = arith.constant 4 : index
    %c0_15 = arith.constant 0 : index
    %c0_16 = arith.constant 0 : index
    %23 = vector.load %arg2[%c4, %c0_15, %c0_16] : memref<9x4x4xf32, #tpu.memory_space<vmem>>, vector<1x4x4xf32>
    %24 = vector.shape_cast %23 : vector<1x4x4xf32> to vector<4x4xf32>
    %25 = vector.extract_strided_slice %1 {offsets = [0, 128], sizes = [4, 324], strides = [1, 1]} : vector<4x580xf32> to vector<4x324xf32>
    %cst_17 = arith.constant dense<0.000000e+00> : vector<4x324xf32>
    %26 = tpu.matmul %24, %25, %cst_17 {dimension_numbers = #tpu.dot_dimension_numbers<[1], [0], [0], [1], [0, 0, 1, 1], [], []>} : vector<4x4xf32>, vector<4x324xf32>, vector<4x324xf32> -> vector<4x324xf32>
    %27 = arith.addf %22, %26 : vector<4x324xf32>
    %c5 = arith.constant 5 : index
    %c0_18 = arith.constant 0 : index
    %c0_19 = arith.constant 0 : index
    %28 = vector.load %arg2[%c5, %c0_18, %c0_19] : memref<9x4x4xf32, #tpu.memory_space<vmem>>, vector<1x4x4xf32>
    %29 = vector.shape_cast %28 : vector<1x4x4xf32> to vector<4x4xf32>
    %30 = vector.extract_strided_slice %1 {offsets = [0, 129], sizes = [4, 324], strides = [1, 1]} : vector<4x580xf32> to vector<4x324xf32>
    %cst_20 = arith.constant dense<0.000000e+00> : vector<4x324xf32>
    %31 = tpu.matmul %29, %30, %cst_20 {dimension_numbers = #tpu.dot_dimension_numbers<[1], [0], [0], [1], [0, 0, 1, 1], [], []>} : vector<4x4xf32>, vector<4x324xf32>, vector<4x324xf32> -> vector<4x324xf32>
    %32 = arith.addf %27, %31 : vector<4x324xf32>
    %c6 = arith.constant 6 : index
    %c0_21 = arith.constant 0 : index
    %c0_22 = arith.constant 0 : index
    %33 = vector.load %arg2[%c6, %c0_21, %c0_22] : memref<9x4x4xf32, #tpu.memory_space<vmem>>, vector<1x4x4xf32>
    %34 = vector.shape_cast %33 : vector<1x4x4xf32> to vector<4x4xf32>
    %35 = vector.extract_strided_slice %1 {offsets = [0, 145], sizes = [4, 324], strides = [1, 1]} : vector<4x580xf32> to vector<4x324xf32>
    %cst_23 = arith.constant dense<0.000000e+00> : vector<4x324xf32>
    %36 = tpu.matmul %34, %35, %cst_23 {dimension_numbers = #tpu.dot_dimension_numbers<[1], [0], [0], [1], [0, 0, 1, 1], [], []>} : vector<4x4xf32>, vector<4x324xf32>, vector<4x324xf32> -> vector<4x324xf32>
    %37 = arith.addf %32, %36 : vector<4x324xf32>
    %c7 = arith.constant 7 : index
    %c0_24 = arith.constant 0 : index
    %c0_25 = arith.constant 0 : index
    %38 = vector.load %arg2[%c7, %c0_24, %c0_25] : memref<9x4x4xf32, #tpu.memory_space<vmem>>, vector<1x4x4xf32>
    %39 = vector.shape_cast %38 : vector<1x4x4xf32> to vector<4x4xf32>
    %40 = vector.extract_strided_slice %1 {offsets = [0, 146], sizes = [4, 324], strides = [1, 1]} : vector<4x580xf32> to vector<4x324xf32>
    %cst_26 = arith.constant dense<0.000000e+00> : vector<4x324xf32>
    %41 = tpu.matmul %39, %40, %cst_26 {dimension_numbers = #tpu.dot_dimension_numbers<[1], [0], [0], [1], [0, 0, 1, 1], [], []>} : vector<4x4xf32>, vector<4x324xf32>, vector<4x324xf32> -> vector<4x324xf32>
    %42 = arith.addf %37, %41 : vector<4x324xf32>
    %c8 = arith.constant 8 : index
    %c0_27 = arith.constant 0 : index
    %c0_28 = arith.constant 0 : index
    %43 = vector.load %arg2[%c8, %c0_27, %c0_28] : memref<9x4x4xf32, #tpu.memory_space<vmem>>, vector<1x4x4xf32>
    %44 = vector.shape_cast %43 : vector<1x4x4xf32> to vector<4x4xf32>
    %45 = vector.extract_strided_slice %1 {offsets = [0, 147], sizes = [4, 324], strides = [1, 1]} : vector<4x580xf32> to vector<4x324xf32>
    %cst_29 = arith.constant dense<0.000000e+00> : vector<4x324xf32>
    %46 = tpu.matmul %44, %45, %cst_29 {dimension_numbers = #tpu.dot_dimension_numbers<[1], [0], [0], [1], [0, 0, 1, 1], [], []>} : vector<4x4xf32>, vector<4x324xf32>, vector<4x324xf32> -> vector<4x324xf32>
    %47 = arith.addf %42, %46 : vector<4x324xf32>
    %c0_30 = arith.constant 0 : index
    %c128 = arith.constant 128 : index
    %48 = vector.load %arg3[%c0_30, %c128] : memref<1x580xf32, #tpu.memory_space<vmem>>, vector<1x324xf32>
    %49 = vector.broadcast %48 : vector<1x324xf32> to vector<4x324xf32>
    %50 = arith.mulf %47, %49 : vector<4x324xf32>
    %cst_31 = arith.constant dense<0.000000e+00> : vector<4xf32>
    %51 = vector.multi_reduction <add>, %50, %cst_31 [1] : vector<4x324xf32> to vector<4xf32>
    %52 = vector.shape_cast %51 : vector<4xf32> to vector<4x1xf32>
    %c0_32 = arith.constant 0 : index
    %c0_33 = arith.constant 0 : index
    %c0_34 = arith.constant 0 : index
    %53 = vector.load %arg5[%c0_32, %c0_33, %c0_34] : memref<1x4x1xf32, #tpu.memory_space<vmem>>, vector<1x4x1xf32>
    %54 = vector.shape_cast %53 : vector<1x4x1xf32> to vector<4x1xf32>
    %55 = vector.shape_cast %52 : vector<4x1xf32> to vector<1x4x1xf32>
    tpu.vector_store %arg5[%c0_32, %c0_33, %c0_34], %55 {strides = array<i32>} : memref<1x4x1xf32, #tpu.memory_space<vmem>>, vector<1x4x1xf32>,
    %56 = arith.mulf %50, %50 : vector<4x324xf32>
    %cst_35 = arith.constant dense<0.000000e+00> : vector<4xf32>
    %57 = vector.multi_reduction <add>, %56, %cst_35 [1] : vector<4x324xf32> to vector<4xf32>
    %58 = vector.shape_cast %57 : vector<4xf32> to vector<4x1xf32>
    %c0_36 = arith.constant 0 : index
    %c0_37 = arith.constant 0 : index
    %c0_38 = arith.constant 0 : index
    %59 = vector.load %arg6[%c0_36, %c0_37, %c0_38] : memref<1x4x1xf32, #tpu.memory_space<vmem>>, vector<1x4x1xf32>
    %60 = vector.shape_cast %59 : vector<1x4x1xf32> to vector<4x1xf32>
    %61 = vector.shape_cast %58 : vector<4x1xf32> to vector<1x4x1xf32>
    tpu.vector_store %arg6[%c0_36, %c0_37, %c0_38], %61 {strides = array<i32>} : memref<1x4x1xf32, #tpu.memory_space<vmem>>, vector<1x4x1xf32>,
    %c0_39 = arith.constant 0 : index
    %c0_40 = arith.constant 0 : index
    %c128_41 = arith.constant 128 : index
    %62 = vector.load %arg4[%c0_39, %c0_40, %c128_41] : memref<1x4x580xf32, #tpu.memory_space<vmem>>, vector<1x4x324xf32>
    %63 = vector.shape_cast %62 : vector<1x4x324xf32> to vector<4x324xf32>
    %64 = vector.shape_cast %50 : vector<4x324xf32> to vector<1x4x324xf32>
    tpu.vector_store %arg4[%c0_39, %c0_40, %c128_41], %64 {strides = array<i32>} : memref<1x4x580xf32, #tpu.memory_space<vmem>>, vector<1x4x324xf32>,
    return
  }
  func.func @transform_0(%arg0: i32) -> (i32, i32, i32) {
    %c0_i32 = arith.constant 0 : i32
    %c0_i32_0 = arith.constant 0 : i32
    %c0_i32_1 = arith.constant 0 : i32
    return %arg0, %c0_i32, %c0_i32_0 : i32, i32, i32
  }
  func.func @transform_1(%arg0: i32) -> (i32, i32, i32) {
    %c0_i32 = arith.constant 0 : i32
    %c0_i32_0 = arith.constant 0 : i32
    %c0_i32_1 = arith.constant 0 : i32
    %c0_i32_2 = arith.constant 0 : i32
    return %c0_i32, %c0_i32_0, %c0_i32_1 : i32, i32, i32
  }
  func.func @transform_2(%arg0: i32) -> (i32, i32) {
    %c0_i32 = arith.constant 0 : i32
    %c0_i32_0 = arith.constant 0 : i32
    %c0_i32_1 = arith.constant 0 : i32
    return %c0_i32, %c0_i32_0 : i32, i32
  }
  func.func @transform_3(%arg0: i32) -> (i32, i32, i32) {
    %c0_i32 = arith.constant 0 : i32
    %c0_i32_0 = arith.constant 0 : i32
    %c0_i32_1 = arith.constant 0 : i32
    return %arg0, %c0_i32, %c0_i32_0 : i32, i32, i32
  }
  func.func @transform_4(%arg0: i32) -> (i32, i32, i32) {
    %c0_i32 = arith.constant 0 : i32
    %c0_i32_0 = arith.constant 0 : i32
    %c0_i32_1 = arith.constant 0 : i32
    return %arg0, %c0_i32, %c0_i32_0 : i32, i32, i32
  }
  func.func @transform_5(%arg0: i32) -> (i32, i32, i32) {
    %c0_i32 = arith.constant 0 : i32
    %c0_i32_0 = arith.constant 0 : i32
    %c0_i32_1 = arith.constant 0 : i32
    return %arg0, %c0_i32, %c0_i32_0 : i32, i32, i32
  }
}

module attributes {stable_mosaic.version = 11 : i64} {
  func.func @kernel(%arg0: i32, %arg1: memref<1x4x580xf32, #tpu.memory_space<vmem>>, %arg2: memref<4x1xf32, #tpu.memory_space<vmem>>, %arg3: memref<4x1xf32, #tpu.memory_space<vmem>>, %arg4: memref<9x4x4xf32, #tpu.memory_space<vmem>>, %arg5: memref<1x580xf32, #tpu.memory_space<vmem>>, %arg6: memref<1x4x580xf32, #tpu.memory_space<vmem>>, %arg7: memref<1x4x1xf32, #tpu.memory_space<vmem>>, %arg8: memref<1x4x1xf32, #tpu.memory_space<vmem>>) attributes {dimension_semantics = [#tpu.dimension_semantics<parallel>], iteration_bounds = array<i64: 2>, scalar_prefetch = 0 : i64, scratch_operands = 0 : i64, tpu.core_type = #tpu.core_type<tc>, window_params = [{transform_indices = @transform_0, window_bounds = array<i64: 1, 4, 580>}, {pipeline_mode = #tpu.pipeline_mode<synchronous>, transform_indices = @transform_1, window_bounds = array<i64: 4, 1>}, {pipeline_mode = #tpu.pipeline_mode<synchronous>, transform_indices = @transform_2, window_bounds = array<i64: 4, 1>}, {pipeline_mode = #tpu.pipeline_mode<synchronous>, transform_indices = @transform_3, window_bounds = array<i64: 9, 4, 4>}, {pipeline_mode = #tpu.pipeline_mode<synchronous>, transform_indices = @transform_4, window_bounds = array<i64: 1, 580>}, {transform_indices = @transform_5, window_bounds = array<i64: 1, 4, 580>}, {transform_indices = @transform_6, window_bounds = array<i64: 1, 4, 1>}, {transform_indices = @transform_7, window_bounds = array<i64: 1, 4, 1>}]} {
    %c0 = arith.constant 0 : index
    %c0_0 = arith.constant 0 : index
    %c0_1 = arith.constant 0 : index
    %0 = vector.load %arg1[%c0, %c0_0, %c0_1] : memref<1x4x580xf32, #tpu.memory_space<vmem>>, vector<1x4x580xf32>
    %1 = vector.shape_cast %0 : vector<1x4x580xf32> to vector<4x580xf32>
    %c0_2 = arith.constant 0 : index
    %c0_3 = arith.constant 0 : index
    %2 = vector.load %arg2[%c0_2, %c0_3] : memref<4x1xf32, #tpu.memory_space<vmem>>, vector<4x1xf32>
    %3 = vector.broadcast %2 : vector<4x1xf32> to vector<4x580xf32>
    %4 = arith.mulf %1, %3 : vector<4x580xf32>
    %c0_4 = arith.constant 0 : index
    %c0_5 = arith.constant 0 : index
    %5 = vector.load %arg3[%c0_4, %c0_5] : memref<4x1xf32, #tpu.memory_space<vmem>>, vector<4x1xf32>
    %6 = vector.broadcast %5 : vector<4x1xf32> to vector<4x580xf32>
    %7 = arith.addf %4, %6 : vector<4x580xf32>
    %cst = arith.constant 0.000000e+00 : f32
    %8 = vector.broadcast %cst : f32 to vector<4x580xf32>
    %9 = arith.maximumf %7, %8 : vector<4x580xf32>
    %c0_6 = arith.constant 0 : index
    %c0_7 = arith.constant 0 : index
    %10 = vector.load %arg5[%c0_6, %c0_7] : memref<1x580xf32, #tpu.memory_space<vmem>>, vector<1x580xf32>
    %cst_8 = arith.constant 0.000000e+00 : f32
    %11 = vector.broadcast %cst_8 : f32 to vector<1x580xf32>
    %12 = arith.cmpf ogt, %10, %11 : vector<1x580xf32>
    %cst_9 = arith.constant 0.000000e+00 : f32
    %13 = vector.shape_cast %12 : vector<1x580xi1> to vector<1x580xi1>
    %14 = vector.broadcast %13 : vector<1x580xi1> to vector<4x580xi1>
    %15 = vector.broadcast %cst_9 : f32 to vector<4x580xf32>
    %16 = arith.select %14, %9, %15 : vector<4x580xi1>, vector<4x580xf32>
    %cst_10 = arith.constant 0.000000e+00 : f32
    %17 = vector.broadcast %cst_10 : f32 to vector<4x324xf32>
    %c0_11 = arith.constant 0 : index
    %c0_12 = arith.constant 0 : index
    %c0_13 = arith.constant 0 : index
    %18 = vector.load %arg4[%c0_11, %c0_12, %c0_13] : memref<9x4x4xf32, #tpu.memory_space<vmem>>, vector<1x4x4xf32>
    %19 = vector.shape_cast %18 : vector<1x4x4xf32> to vector<4x4xf32>
    %20 = vector.extract_strided_slice %16 {offsets = [0, 109], sizes = [4, 324], strides = [1, 1]} : vector<4x580xf32> to vector<4x324xf32>
    %cst_14 = arith.constant dense<0.000000e+00> : vector<4x324xf32>
    %21 = tpu.matmul %19, %20, %cst_14 {dimension_numbers = #tpu.dot_dimension_numbers<[1], [0], [0], [1], [0, 0, 1, 1], [], []>} : vector<4x4xf32>, vector<4x324xf32>, vector<4x324xf32> -> vector<4x324xf32>
    %22 = arith.addf %17, %21 : vector<4x324xf32>
    %c1 = arith.constant 1 : index
    %c0_15 = arith.constant 0 : index
    %c0_16 = arith.constant 0 : index
    %23 = vector.load %arg4[%c1, %c0_15, %c0_16] : memref<9x4x4xf32, #tpu.memory_space<vmem>>, vector<1x4x4xf32>
    %24 = vector.shape_cast %23 : vector<1x4x4xf32> to vector<4x4xf32>
    %25 = vector.extract_strided_slice %16 {offsets = [0, 110], sizes = [4, 324], strides = [1, 1]} : vector<4x580xf32> to vector<4x324xf32>
    %cst_17 = arith.constant dense<0.000000e+00> : vector<4x324xf32>
    %26 = tpu.matmul %24, %25, %cst_17 {dimension_numbers = #tpu.dot_dimension_numbers<[1], [0], [0], [1], [0, 0, 1, 1], [], []>} : vector<4x4xf32>, vector<4x324xf32>, vector<4x324xf32> -> vector<4x324xf32>
    %27 = arith.addf %22, %26 : vector<4x324xf32>
    %c2 = arith.constant 2 : index
    %c0_18 = arith.constant 0 : index
    %c0_19 = arith.constant 0 : index
    %28 = vector.load %arg4[%c2, %c0_18, %c0_19] : memref<9x4x4xf32, #tpu.memory_space<vmem>>, vector<1x4x4xf32>
    %29 = vector.shape_cast %28 : vector<1x4x4xf32> to vector<4x4xf32>
    %30 = vector.extract_strided_slice %16 {offsets = [0, 111], sizes = [4, 324], strides = [1, 1]} : vector<4x580xf32> to vector<4x324xf32>
    %cst_20 = arith.constant dense<0.000000e+00> : vector<4x324xf32>
    %31 = tpu.matmul %29, %30, %cst_20 {dimension_numbers = #tpu.dot_dimension_numbers<[1], [0], [0], [1], [0, 0, 1, 1], [], []>} : vector<4x4xf32>, vector<4x324xf32>, vector<4x324xf32> -> vector<4x324xf32>
    %32 = arith.addf %27, %31 : vector<4x324xf32>
    %c3 = arith.constant 3 : index
    %c0_21 = arith.constant 0 : index
    %c0_22 = arith.constant 0 : index
    %33 = vector.load %arg4[%c3, %c0_21, %c0_22] : memref<9x4x4xf32, #tpu.memory_space<vmem>>, vector<1x4x4xf32>
    %34 = vector.shape_cast %33 : vector<1x4x4xf32> to vector<4x4xf32>
    %35 = vector.extract_strided_slice %16 {offsets = [0, 127], sizes = [4, 324], strides = [1, 1]} : vector<4x580xf32> to vector<4x324xf32>
    %cst_23 = arith.constant dense<0.000000e+00> : vector<4x324xf32>
    %36 = tpu.matmul %34, %35, %cst_23 {dimension_numbers = #tpu.dot_dimension_numbers<[1], [0], [0], [1], [0, 0, 1, 1], [], []>} : vector<4x4xf32>, vector<4x324xf32>, vector<4x324xf32> -> vector<4x324xf32>
    %37 = arith.addf %32, %36 : vector<4x324xf32>
    %c4 = arith.constant 4 : index
    %c0_24 = arith.constant 0 : index
    %c0_25 = arith.constant 0 : index
    %38 = vector.load %arg4[%c4, %c0_24, %c0_25] : memref<9x4x4xf32, #tpu.memory_space<vmem>>, vector<1x4x4xf32>
    %39 = vector.shape_cast %38 : vector<1x4x4xf32> to vector<4x4xf32>
    %40 = vector.extract_strided_slice %16 {offsets = [0, 128], sizes = [4, 324], strides = [1, 1]} : vector<4x580xf32> to vector<4x324xf32>
    %cst_26 = arith.constant dense<0.000000e+00> : vector<4x324xf32>
    %41 = tpu.matmul %39, %40, %cst_26 {dimension_numbers = #tpu.dot_dimension_numbers<[1], [0], [0], [1], [0, 0, 1, 1], [], []>} : vector<4x4xf32>, vector<4x324xf32>, vector<4x324xf32> -> vector<4x324xf32>
    %42 = arith.addf %37, %41 : vector<4x324xf32>
    %c5 = arith.constant 5 : index
    %c0_27 = arith.constant 0 : index
    %c0_28 = arith.constant 0 : index
    %43 = vector.load %arg4[%c5, %c0_27, %c0_28] : memref<9x4x4xf32, #tpu.memory_space<vmem>>, vector<1x4x4xf32>
    %44 = vector.shape_cast %43 : vector<1x4x4xf32> to vector<4x4xf32>
    %45 = vector.extract_strided_slice %16 {offsets = [0, 129], sizes = [4, 324], strides = [1, 1]} : vector<4x580xf32> to vector<4x324xf32>
    %cst_29 = arith.constant dense<0.000000e+00> : vector<4x324xf32>
    %46 = tpu.matmul %44, %45, %cst_29 {dimension_numbers = #tpu.dot_dimension_numbers<[1], [0], [0], [1], [0, 0, 1, 1], [], []>} : vector<4x4xf32>, vector<4x324xf32>, vector<4x324xf32> -> vector<4x324xf32>
    %47 = arith.addf %42, %46 : vector<4x324xf32>
    %c6 = arith.constant 6 : index
    %c0_30 = arith.constant 0 : index
    %c0_31 = arith.constant 0 : index
    %48 = vector.load %arg4[%c6, %c0_30, %c0_31] : memref<9x4x4xf32, #tpu.memory_space<vmem>>, vector<1x4x4xf32>
    %49 = vector.shape_cast %48 : vector<1x4x4xf32> to vector<4x4xf32>
    %50 = vector.extract_strided_slice %16 {offsets = [0, 145], sizes = [4, 324], strides = [1, 1]} : vector<4x580xf32> to vector<4x324xf32>
    %cst_32 = arith.constant dense<0.000000e+00> : vector<4x324xf32>
    %51 = tpu.matmul %49, %50, %cst_32 {dimension_numbers = #tpu.dot_dimension_numbers<[1], [0], [0], [1], [0, 0, 1, 1], [], []>} : vector<4x4xf32>, vector<4x324xf32>, vector<4x324xf32> -> vector<4x324xf32>
    %52 = arith.addf %47, %51 : vector<4x324xf32>
    %c7 = arith.constant 7 : index
    %c0_33 = arith.constant 0 : index
    %c0_34 = arith.constant 0 : index
    %53 = vector.load %arg4[%c7, %c0_33, %c0_34] : memref<9x4x4xf32, #tpu.memory_space<vmem>>, vector<1x4x4xf32>
    %54 = vector.shape_cast %53 : vector<1x4x4xf32> to vector<4x4xf32>
    %55 = vector.extract_strided_slice %16 {offsets = [0, 146], sizes = [4, 324], strides = [1, 1]} : vector<4x580xf32> to vector<4x324xf32>
    %cst_35 = arith.constant dense<0.000000e+00> : vector<4x324xf32>
    %56 = tpu.matmul %54, %55, %cst_35 {dimension_numbers = #tpu.dot_dimension_numbers<[1], [0], [0], [1], [0, 0, 1, 1], [], []>} : vector<4x4xf32>, vector<4x324xf32>, vector<4x324xf32> -> vector<4x324xf32>
    %57 = arith.addf %52, %56 : vector<4x324xf32>
    %c8 = arith.constant 8 : index
    %c0_36 = arith.constant 0 : index
    %c0_37 = arith.constant 0 : index
    %58 = vector.load %arg4[%c8, %c0_36, %c0_37] : memref<9x4x4xf32, #tpu.memory_space<vmem>>, vector<1x4x4xf32>
    %59 = vector.shape_cast %58 : vector<1x4x4xf32> to vector<4x4xf32>
    %60 = vector.extract_strided_slice %16 {offsets = [0, 147], sizes = [4, 324], strides = [1, 1]} : vector<4x580xf32> to vector<4x324xf32>
    %cst_38 = arith.constant dense<0.000000e+00> : vector<4x324xf32>
    %61 = tpu.matmul %59, %60, %cst_38 {dimension_numbers = #tpu.dot_dimension_numbers<[1], [0], [0], [1], [0, 0, 1, 1], [], []>} : vector<4x4xf32>, vector<4x324xf32>, vector<4x324xf32> -> vector<4x324xf32>
    %62 = arith.addf %57, %61 : vector<4x324xf32>
    %c0_39 = arith.constant 0 : index
    %c128 = arith.constant 128 : index
    %63 = vector.load %arg5[%c0_39, %c128] : memref<1x580xf32, #tpu.memory_space<vmem>>, vector<1x324xf32>
    %64 = vector.broadcast %63 : vector<1x324xf32> to vector<4x324xf32>
    %65 = arith.mulf %62, %64 : vector<4x324xf32>
    %cst_40 = arith.constant dense<0.000000e+00> : vector<4xf32>
    %66 = vector.multi_reduction <add>, %65, %cst_40 [1] : vector<4x324xf32> to vector<4xf32>
    %67 = vector.shape_cast %66 : vector<4xf32> to vector<4x1xf32>
    %c0_41 = arith.constant 0 : index
    %c0_42 = arith.constant 0 : index
    %c0_43 = arith.constant 0 : index
    %68 = vector.load %arg7[%c0_41, %c0_42, %c0_43] : memref<1x4x1xf32, #tpu.memory_space<vmem>>, vector<1x4x1xf32>
    %69 = vector.shape_cast %68 : vector<1x4x1xf32> to vector<4x1xf32>
    %70 = vector.shape_cast %67 : vector<4x1xf32> to vector<1x4x1xf32>
    tpu.vector_store %arg7[%c0_41, %c0_42, %c0_43], %70 {strides = array<i32>} : memref<1x4x1xf32, #tpu.memory_space<vmem>>, vector<1x4x1xf32>,
    %71 = arith.mulf %65, %65 : vector<4x324xf32>
    %cst_44 = arith.constant dense<0.000000e+00> : vector<4xf32>
    %72 = vector.multi_reduction <add>, %71, %cst_44 [1] : vector<4x324xf32> to vector<4xf32>
    %73 = vector.shape_cast %72 : vector<4xf32> to vector<4x1xf32>
    %c0_45 = arith.constant 0 : index
    %c0_46 = arith.constant 0 : index
    %c0_47 = arith.constant 0 : index
    %74 = vector.load %arg8[%c0_45, %c0_46, %c0_47] : memref<1x4x1xf32, #tpu.memory_space<vmem>>, vector<1x4x1xf32>
    %75 = vector.shape_cast %74 : vector<1x4x1xf32> to vector<4x1xf32>
    %76 = vector.shape_cast %73 : vector<4x1xf32> to vector<1x4x1xf32>
    tpu.vector_store %arg8[%c0_45, %c0_46, %c0_47], %76 {strides = array<i32>} : memref<1x4x1xf32, #tpu.memory_space<vmem>>, vector<1x4x1xf32>,
    %c0_48 = arith.constant 0 : index
    %c0_49 = arith.constant 0 : index
    %c128_50 = arith.constant 128 : index
    %77 = vector.load %arg6[%c0_48, %c0_49, %c128_50] : memref<1x4x580xf32, #tpu.memory_space<vmem>>, vector<1x4x324xf32>
    %78 = vector.shape_cast %77 : vector<1x4x324xf32> to vector<4x324xf32>
    %79 = vector.shape_cast %65 : vector<4x324xf32> to vector<1x4x324xf32>
    tpu.vector_store %arg6[%c0_48, %c0_49, %c128_50], %79 {strides = array<i32>} : memref<1x4x580xf32, #tpu.memory_space<vmem>>, vector<1x4x324xf32>,
    return
  }
  func.func @transform_0(%arg0: i32) -> (i32, i32, i32) {
    %c0_i32 = arith.constant 0 : i32
    %c0_i32_0 = arith.constant 0 : i32
    %c0_i32_1 = arith.constant 0 : i32
    return %arg0, %c0_i32, %c0_i32_0 : i32, i32, i32
  }
  func.func @transform_1(%arg0: i32) -> (i32, i32) {
    %c0_i32 = arith.constant 0 : i32
    %c0_i32_0 = arith.constant 0 : i32
    %c0_i32_1 = arith.constant 0 : i32
    return %c0_i32, %c0_i32_0 : i32, i32
  }
  func.func @transform_2(%arg0: i32) -> (i32, i32) {
    %c0_i32 = arith.constant 0 : i32
    %c0_i32_0 = arith.constant 0 : i32
    %c0_i32_1 = arith.constant 0 : i32
    return %c0_i32, %c0_i32_0 : i32, i32
  }
  func.func @transform_3(%arg0: i32) -> (i32, i32, i32) {
    %c0_i32 = arith.constant 0 : i32
    %c0_i32_0 = arith.constant 0 : i32
    %c0_i32_1 = arith.constant 0 : i32
    %c0_i32_2 = arith.constant 0 : i32
    return %c0_i32, %c0_i32_0, %c0_i32_1 : i32, i32, i32
  }
  func.func @transform_4(%arg0: i32) -> (i32, i32) {
    %c0_i32 = arith.constant 0 : i32
    %c0_i32_0 = arith.constant 0 : i32
    %c0_i32_1 = arith.constant 0 : i32
    return %c0_i32, %c0_i32_0 : i32, i32
  }
  func.func @transform_5(%arg0: i32) -> (i32, i32, i32) {
    %c0_i32 = arith.constant 0 : i32
    %c0_i32_0 = arith.constant 0 : i32
    %c0_i32_1 = arith.constant 0 : i32
    return %arg0, %c0_i32, %c0_i32_0 : i32, i32, i32
  }
  func.func @transform_6(%arg0: i32) -> (i32, i32, i32) {
    %c0_i32 = arith.constant 0 : i32
    %c0_i32_0 = arith.constant 0 : i32
    %c0_i32_1 = arith.constant 0 : i32
    return %arg0, %c0_i32, %c0_i32_0 : i32, i32, i32
  }
  func.func @transform_7(%arg0: i32) -> (i32, i32, i32) {
    %c0_i32 = arith.constant 0 : i32
    %c0_i32_0 = arith.constant 0 : i32
    %c0_i32_1 = arith.constant 0 : i32
    return %arg0, %c0_i32, %c0_i32_0 : i32, i32, i32
  }
}

module attributes {stable_mosaic.version = 11 : i64} {
  func.func @kernel(%arg0: i32, %arg1: memref<1x4x580xf32, #tpu.memory_space<vmem>>, %arg2: memref<1x4x580xf32, #tpu.memory_space<vmem>>, %arg3: memref<4x1xf32, #tpu.memory_space<vmem>>, %arg4: memref<4x1xf32, #tpu.memory_space<vmem>>, %arg5: memref<9x8x4xf32, #tpu.memory_space<vmem>>, %arg6: memref<1x580xf32, #tpu.memory_space<vmem>>, %arg7: memref<1x8x580xf32, #tpu.memory_space<vmem>>, %arg8: memref<1x8x1xf32, #tpu.memory_space<vmem>>, %arg9: memref<1x8x1xf32, #tpu.memory_space<vmem>>) attributes {dimension_semantics = [#tpu.dimension_semantics<parallel>], iteration_bounds = array<i64: 2>, scalar_prefetch = 0 : i64, scratch_operands = 0 : i64, tpu.core_type = #tpu.core_type<tc>, window_params = [{transform_indices = @transform_0, window_bounds = array<i64: 1, 4, 580>}, {transform_indices = @transform_1, window_bounds = array<i64: 1, 4, 580>}, {pipeline_mode = #tpu.pipeline_mode<synchronous>, transform_indices = @transform_2, window_bounds = array<i64: 4, 1>}, {pipeline_mode = #tpu.pipeline_mode<synchronous>, transform_indices = @transform_3, window_bounds = array<i64: 4, 1>}, {pipeline_mode = #tpu.pipeline_mode<synchronous>, transform_indices = @transform_4, window_bounds = array<i64: 9, 8, 4>}, {pipeline_mode = #tpu.pipeline_mode<synchronous>, transform_indices = @transform_5, window_bounds = array<i64: 1, 580>}, {transform_indices = @transform_6, window_bounds = array<i64: 1, 8, 580>}, {transform_indices = @transform_7, window_bounds = array<i64: 1, 8, 1>}, {transform_indices = @transform_8, window_bounds = array<i64: 1, 8, 1>}]} {
    %c0 = arith.constant 0 : index
    %c0_0 = arith.constant 0 : index
    %c0_1 = arith.constant 0 : index
    %0 = vector.load %arg1[%c0, %c0_0, %c0_1] : memref<1x4x580xf32, #tpu.memory_space<vmem>>, vector<1x4x580xf32>
    %1 = vector.shape_cast %0 : vector<1x4x580xf32> to vector<4x580xf32>
    %c0_2 = arith.constant 0 : index
    %c0_3 = arith.constant 0 : index
    %2 = vector.load %arg3[%c0_2, %c0_3] : memref<4x1xf32, #tpu.memory_space<vmem>>, vector<4x1xf32>
    %3 = vector.broadcast %2 : vector<4x1xf32> to vector<4x580xf32>
    %4 = arith.mulf %1, %3 : vector<4x580xf32>
    %c0_4 = arith.constant 0 : index
    %c0_5 = arith.constant 0 : index
    %5 = vector.load %arg4[%c0_4, %c0_5] : memref<4x1xf32, #tpu.memory_space<vmem>>, vector<4x1xf32>
    %6 = vector.broadcast %5 : vector<4x1xf32> to vector<4x580xf32>
    %7 = arith.addf %4, %6 : vector<4x580xf32>
    %cst = arith.constant 0.000000e+00 : f32
    %8 = vector.broadcast %cst : f32 to vector<4x580xf32>
    %9 = arith.maximumf %7, %8 : vector<4x580xf32>
    %c0_6 = arith.constant 0 : index
    %c0_7 = arith.constant 0 : index
    %c0_8 = arith.constant 0 : index
    %10 = vector.load %arg2[%c0_6, %c0_7, %c0_8] : memref<1x4x580xf32, #tpu.memory_space<vmem>>, vector<1x4x580xf32>
    %11 = vector.shape_cast %10 : vector<1x4x580xf32> to vector<4x580xf32>
    %12 = arith.addf %9, %11 : vector<4x580xf32>
    %cst_9 = arith.constant 0.000000e+00 : f32
    %13 = vector.broadcast %cst_9 : f32 to vector<4x580xf32>
    %14 = arith.maximumf %12, %13 : vector<4x580xf32>
    %c0_10 = arith.constant 0 : index
    %c0_11 = arith.constant 0 : index
    %15 = vector.load %arg6[%c0_10, %c0_11] : memref<1x580xf32, #tpu.memory_space<vmem>>, vector<1x580xf32>
    %cst_12 = arith.constant 0.000000e+00 : f32
    %16 = vector.broadcast %cst_12 : f32 to vector<1x580xf32>
    %17 = arith.cmpf ogt, %15, %16 : vector<1x580xf32>
    %cst_13 = arith.constant 0.000000e+00 : f32
    %18 = vector.shape_cast %17 : vector<1x580xi1> to vector<1x580xi1>
    %19 = vector.broadcast %18 : vector<1x580xi1> to vector<4x580xi1>
    %20 = vector.broadcast %cst_13 : f32 to vector<4x580xf32>
    %21 = arith.select %19, %14, %20 : vector<4x580xi1>, vector<4x580xf32>
    %cst_14 = arith.constant 0.000000e+00 : f32
    %22 = vector.broadcast %cst_14 : f32 to vector<8x324xf32>
    %c0_15 = arith.constant 0 : index
    %c0_16 = arith.constant 0 : index
    %c0_17 = arith.constant 0 : index
    %23 = vector.load %arg5[%c0_15, %c0_16, %c0_17] : memref<9x8x4xf32, #tpu.memory_space<vmem>>, vector<1x8x4xf32>
    %24 = vector.shape_cast %23 : vector<1x8x4xf32> to vector<8x4xf32>
    %25 = vector.extract_strided_slice %21 {offsets = [0, 109], sizes = [4, 324], strides = [1, 1]} : vector<4x580xf32> to vector<4x324xf32>
    %cst_18 = arith.constant dense<0.000000e+00> : vector<8x324xf32>
    %26 = tpu.matmul %24, %25, %cst_18 {dimension_numbers = #tpu.dot_dimension_numbers<[1], [0], [0], [1], [0, 0, 1, 1], [], []>} : vector<8x4xf32>, vector<4x324xf32>, vector<8x324xf32> -> vector<8x324xf32>
    %27 = arith.addf %22, %26 : vector<8x324xf32>
    %c1 = arith.constant 1 : index
    %c0_19 = arith.constant 0 : index
    %c0_20 = arith.constant 0 : index
    %28 = vector.load %arg5[%c1, %c0_19, %c0_20] : memref<9x8x4xf32, #tpu.memory_space<vmem>>, vector<1x8x4xf32>
    %29 = vector.shape_cast %28 : vector<1x8x4xf32> to vector<8x4xf32>
    %30 = vector.extract_strided_slice %21 {offsets = [0, 110], sizes = [4, 324], strides = [1, 1]} : vector<4x580xf32> to vector<4x324xf32>
    %cst_21 = arith.constant dense<0.000000e+00> : vector<8x324xf32>
    %31 = tpu.matmul %29, %30, %cst_21 {dimension_numbers = #tpu.dot_dimension_numbers<[1], [0], [0], [1], [0, 0, 1, 1], [], []>} : vector<8x4xf32>, vector<4x324xf32>, vector<8x324xf32> -> vector<8x324xf32>
    %32 = arith.addf %27, %31 : vector<8x324xf32>
    %c2 = arith.constant 2 : index
    %c0_22 = arith.constant 0 : index
    %c0_23 = arith.constant 0 : index
    %33 = vector.load %arg5[%c2, %c0_22, %c0_23] : memref<9x8x4xf32, #tpu.memory_space<vmem>>, vector<1x8x4xf32>
    %34 = vector.shape_cast %33 : vector<1x8x4xf32> to vector<8x4xf32>
    %35 = vector.extract_strided_slice %21 {offsets = [0, 111], sizes = [4, 324], strides = [1, 1]} : vector<4x580xf32> to vector<4x324xf32>
    %cst_24 = arith.constant dense<0.000000e+00> : vector<8x324xf32>
    %36 = tpu.matmul %34, %35, %cst_24 {dimension_numbers = #tpu.dot_dimension_numbers<[1], [0], [0], [1], [0, 0, 1, 1], [], []>} : vector<8x4xf32>, vector<4x324xf32>, vector<8x324xf32> -> vector<8x324xf32>
    %37 = arith.addf %32, %36 : vector<8x324xf32>
    %c3 = arith.constant 3 : index
    %c0_25 = arith.constant 0 : index
    %c0_26 = arith.constant 0 : index
    %38 = vector.load %arg5[%c3, %c0_25, %c0_26] : memref<9x8x4xf32, #tpu.memory_space<vmem>>, vector<1x8x4xf32>
    %39 = vector.shape_cast %38 : vector<1x8x4xf32> to vector<8x4xf32>
    %40 = vector.extract_strided_slice %21 {offsets = [0, 127], sizes = [4, 324], strides = [1, 1]} : vector<4x580xf32> to vector<4x324xf32>
    %cst_27 = arith.constant dense<0.000000e+00> : vector<8x324xf32>
    %41 = tpu.matmul %39, %40, %cst_27 {dimension_numbers = #tpu.dot_dimension_numbers<[1], [0], [0], [1], [0, 0, 1, 1], [], []>} : vector<8x4xf32>, vector<4x324xf32>, vector<8x324xf32> -> vector<8x324xf32>
    %42 = arith.addf %37, %41 : vector<8x324xf32>
    %c4 = arith.constant 4 : index
    %c0_28 = arith.constant 0 : index
    %c0_29 = arith.constant 0 : index
    %43 = vector.load %arg5[%c4, %c0_28, %c0_29] : memref<9x8x4xf32, #tpu.memory_space<vmem>>, vector<1x8x4xf32>
    %44 = vector.shape_cast %43 : vector<1x8x4xf32> to vector<8x4xf32>
    %45 = vector.extract_strided_slice %21 {offsets = [0, 128], sizes = [4, 324], strides = [1, 1]} : vector<4x580xf32> to vector<4x324xf32>
    %cst_30 = arith.constant dense<0.000000e+00> : vector<8x324xf32>
    %46 = tpu.matmul %44, %45, %cst_30 {dimension_numbers = #tpu.dot_dimension_numbers<[1], [0], [0], [1], [0, 0, 1, 1], [], []>} : vector<8x4xf32>, vector<4x324xf32>, vector<8x324xf32> -> vector<8x324xf32>
    %47 = arith.addf %42, %46 : vector<8x324xf32>
    %c5 = arith.constant 5 : index
    %c0_31 = arith.constant 0 : index
    %c0_32 = arith.constant 0 : index
    %48 = vector.load %arg5[%c5, %c0_31, %c0_32] : memref<9x8x4xf32, #tpu.memory_space<vmem>>, vector<1x8x4xf32>
    %49 = vector.shape_cast %48 : vector<1x8x4xf32> to vector<8x4xf32>
    %50 = vector.extract_strided_slice %21 {offsets = [0, 129], sizes = [4, 324], strides = [1, 1]} : vector<4x580xf32> to vector<4x324xf32>
    %cst_33 = arith.constant dense<0.000000e+00> : vector<8x324xf32>
    %51 = tpu.matmul %49, %50, %cst_33 {dimension_numbers = #tpu.dot_dimension_numbers<[1], [0], [0], [1], [0, 0, 1, 1], [], []>} : vector<8x4xf32>, vector<4x324xf32>, vector<8x324xf32> -> vector<8x324xf32>
    %52 = arith.addf %47, %51 : vector<8x324xf32>
    %c6 = arith.constant 6 : index
    %c0_34 = arith.constant 0 : index
    %c0_35 = arith.constant 0 : index
    %53 = vector.load %arg5[%c6, %c0_34, %c0_35] : memref<9x8x4xf32, #tpu.memory_space<vmem>>, vector<1x8x4xf32>
    %54 = vector.shape_cast %53 : vector<1x8x4xf32> to vector<8x4xf32>
    %55 = vector.extract_strided_slice %21 {offsets = [0, 145], sizes = [4, 324], strides = [1, 1]} : vector<4x580xf32> to vector<4x324xf32>
    %cst_36 = arith.constant dense<0.000000e+00> : vector<8x324xf32>
    %56 = tpu.matmul %54, %55, %cst_36 {dimension_numbers = #tpu.dot_dimension_numbers<[1], [0], [0], [1], [0, 0, 1, 1], [], []>} : vector<8x4xf32>, vector<4x324xf32>, vector<8x324xf32> -> vector<8x324xf32>
    %57 = arith.addf %52, %56 : vector<8x324xf32>
    %c7 = arith.constant 7 : index
    %c0_37 = arith.constant 0 : index
    %c0_38 = arith.constant 0 : index
    %58 = vector.load %arg5[%c7, %c0_37, %c0_38] : memref<9x8x4xf32, #tpu.memory_space<vmem>>, vector<1x8x4xf32>
    %59 = vector.shape_cast %58 : vector<1x8x4xf32> to vector<8x4xf32>
    %60 = vector.extract_strided_slice %21 {offsets = [0, 146], sizes = [4, 324], strides = [1, 1]} : vector<4x580xf32> to vector<4x324xf32>
    %cst_39 = arith.constant dense<0.000000e+00> : vector<8x324xf32>
    %61 = tpu.matmul %59, %60, %cst_39 {dimension_numbers = #tpu.dot_dimension_numbers<[1], [0], [0], [1], [0, 0, 1, 1], [], []>} : vector<8x4xf32>, vector<4x324xf32>, vector<8x324xf32> -> vector<8x324xf32>
    %62 = arith.addf %57, %61 : vector<8x324xf32>
    %c8 = arith.constant 8 : index
    %c0_40 = arith.constant 0 : index
    %c0_41 = arith.constant 0 : index
    %63 = vector.load %arg5[%c8, %c0_40, %c0_41] : memref<9x8x4xf32, #tpu.memory_space<vmem>>, vector<1x8x4xf32>
    %64 = vector.shape_cast %63 : vector<1x8x4xf32> to vector<8x4xf32>
    %65 = vector.extract_strided_slice %21 {offsets = [0, 147], sizes = [4, 324], strides = [1, 1]} : vector<4x580xf32> to vector<4x324xf32>
    %cst_42 = arith.constant dense<0.000000e+00> : vector<8x324xf32>
    %66 = tpu.matmul %64, %65, %cst_42 {dimension_numbers = #tpu.dot_dimension_numbers<[1], [0], [0], [1], [0, 0, 1, 1], [], []>} : vector<8x4xf32>, vector<4x324xf32>, vector<8x324xf32> -> vector<8x324xf32>
    %67 = arith.addf %62, %66 : vector<8x324xf32>
    %c0_43 = arith.constant 0 : index
    %c128 = arith.constant 128 : index
    %68 = vector.load %arg6[%c0_43, %c128] : memref<1x580xf32, #tpu.memory_space<vmem>>, vector<1x324xf32>
    %69 = vector.broadcast %68 : vector<1x324xf32> to vector<8x324xf32>
    %70 = arith.mulf %67, %69 : vector<8x324xf32>
    %cst_44 = arith.constant dense<0.000000e+00> : vector<8xf32>
    %71 = vector.multi_reduction <add>, %70, %cst_44 [1] : vector<8x324xf32> to vector<8xf32>
    %72 = vector.shape_cast %71 : vector<8xf32> to vector<8x1xf32>
    %c0_45 = arith.constant 0 : index
    %c0_46 = arith.constant 0 : index
    %c0_47 = arith.constant 0 : index
    %73 = vector.load %arg8[%c0_45, %c0_46, %c0_47] : memref<1x8x1xf32, #tpu.memory_space<vmem>>, vector<1x8x1xf32>
    %74 = vector.shape_cast %73 : vector<1x8x1xf32> to vector<8x1xf32>
    %75 = vector.shape_cast %72 : vector<8x1xf32> to vector<1x8x1xf32>
    tpu.vector_store %arg8[%c0_45, %c0_46, %c0_47], %75 {strides = array<i32>} : memref<1x8x1xf32, #tpu.memory_space<vmem>>, vector<1x8x1xf32>,
    %76 = arith.mulf %70, %70 : vector<8x324xf32>
    %cst_48 = arith.constant dense<0.000000e+00> : vector<8xf32>
    %77 = vector.multi_reduction <add>, %76, %cst_48 [1] : vector<8x324xf32> to vector<8xf32>
    %78 = vector.shape_cast %77 : vector<8xf32> to vector<8x1xf32>
    %c0_49 = arith.constant 0 : index
    %c0_50 = arith.constant 0 : index
    %c0_51 = arith.constant 0 : index
    %79 = vector.load %arg9[%c0_49, %c0_50, %c0_51] : memref<1x8x1xf32, #tpu.memory_space<vmem>>, vector<1x8x1xf32>
    %80 = vector.shape_cast %79 : vector<1x8x1xf32> to vector<8x1xf32>
    %81 = vector.shape_cast %78 : vector<8x1xf32> to vector<1x8x1xf32>
    tpu.vector_store %arg9[%c0_49, %c0_50, %c0_51], %81 {strides = array<i32>} : memref<1x8x1xf32, #tpu.memory_space<vmem>>, vector<1x8x1xf32>,
    %c0_52 = arith.constant 0 : index
    %c0_53 = arith.constant 0 : index
    %c128_54 = arith.constant 128 : index
    %82 = vector.load %arg7[%c0_52, %c0_53, %c128_54] : memref<1x8x580xf32, #tpu.memory_space<vmem>>, vector<1x8x324xf32>
    %83 = vector.shape_cast %82 : vector<1x8x324xf32> to vector<8x324xf32>
    %84 = vector.shape_cast %70 : vector<8x324xf32> to vector<1x8x324xf32>
    tpu.vector_store %arg7[%c0_52, %c0_53, %c128_54], %84 {strides = array<i32>} : memref<1x8x580xf32, #tpu.memory_space<vmem>>, vector<1x8x324xf32>,
    return
  }
  func.func @transform_0(%arg0: i32) -> (i32, i32, i32) {
    %c0_i32 = arith.constant 0 : i32
    %c0_i32_0 = arith.constant 0 : i32
    %c0_i32_1 = arith.constant 0 : i32
    return %arg0, %c0_i32, %c0_i32_0 : i32, i32, i32
  }
  func.func @transform_1(%arg0: i32) -> (i32, i32, i32) {
    %c0_i32 = arith.constant 0 : i32
    %c0_i32_0 = arith.constant 0 : i32
    %c0_i32_1 = arith.constant 0 : i32
    return %arg0, %c0_i32, %c0_i32_0 : i32, i32, i32
  }
  func.func @transform_2(%arg0: i32) -> (i32, i32) {
    %c0_i32 = arith.constant 0 : i32
    %c0_i32_0 = arith.constant 0 : i32
    %c0_i32_1 = arith.constant 0 : i32
    return %c0_i32, %c0_i32_0 : i32, i32
  }
  func.func @transform_3(%arg0: i32) -> (i32, i32) {
    %c0_i32 = arith.constant 0 : i32
    %c0_i32_0 = arith.constant 0 : i32
    %c0_i32_1 = arith.constant 0 : i32
    return %c0_i32, %c0_i32_0 : i32, i32
  }
  func.func @transform_4(%arg0: i32) -> (i32, i32, i32) {
    %c0_i32 = arith.constant 0 : i32
    %c0_i32_0 = arith.constant 0 : i32
    %c0_i32_1 = arith.constant 0 : i32
    %c0_i32_2 = arith.constant 0 : i32
    return %c0_i32, %c0_i32_0, %c0_i32_1 : i32, i32, i32
  }
  func.func @transform_5(%arg0: i32) -> (i32, i32) {
    %c0_i32 = arith.constant 0 : i32
    %c0_i32_0 = arith.constant 0 : i32
    %c0_i32_1 = arith.constant 0 : i32
    return %c0_i32, %c0_i32_0 : i32, i32
  }
  func.func @transform_6(%arg0: i32) -> (i32, i32, i32) {
    %c0_i32 = arith.constant 0 : i32
    %c0_i32_0 = arith.constant 0 : i32
    %c0_i32_1 = arith.constant 0 : i32
    return %arg0, %c0_i32, %c0_i32_0 : i32, i32, i32
  }
  func.func @transform_7(%arg0: i32) -> (i32, i32, i32) {
    %c0_i32 = arith.constant 0 : i32
    %c0_i32_0 = arith.constant 0 : i32
    %c0_i32_1 = arith.constant 0 : i32
    return %arg0, %c0_i32, %c0_i32_0 : i32, i32, i32
  }
  func.func @transform_8(%arg0: i32) -> (i32, i32, i32) {
    %c0_i32 = arith.constant 0 : i32
    %c0_i32_0 = arith.constant 0 : i32
    %c0_i32_1 = arith.constant 0 : i32
    return %arg0, %c0_i32, %c0_i32_0 : i32, i32, i32
  }
}

module attributes {stable_mosaic.version = 11 : i64} {
  func.func @kernel(%arg0: i32, %arg1: memref<1x8x580xf32, #tpu.memory_space<vmem>>, %arg2: memref<8x1xf32, #tpu.memory_space<vmem>>, %arg3: memref<8x1xf32, #tpu.memory_space<vmem>>, %arg4: memref<1x8x324xf32, #tpu.memory_space<vmem>>) attributes {dimension_semantics = [#tpu.dimension_semantics<parallel>], iteration_bounds = array<i64: 2>, scalar_prefetch = 0 : i64, scratch_operands = 0 : i64, tpu.core_type = #tpu.core_type<tc>, window_params = [{transform_indices = @transform_0, window_bounds = array<i64: 1, 8, 580>}, {pipeline_mode = #tpu.pipeline_mode<synchronous>, transform_indices = @transform_1, window_bounds = array<i64: 8, 1>}, {pipeline_mode = #tpu.pipeline_mode<synchronous>, transform_indices = @transform_2, window_bounds = array<i64: 8, 1>}, {transform_indices = @transform_3, window_bounds = array<i64: 1, 8, 324>}]} {
    %c0 = arith.constant 0 : index
    %c0_0 = arith.constant 0 : index
    %c128 = arith.constant 128 : index
    %0 = vector.load %arg1[%c0, %c0_0, %c128] : memref<1x8x580xf32, #tpu.memory_space<vmem>>, vector<1x8x324xf32>
    %1 = vector.shape_cast %0 : vector<1x8x324xf32> to vector<8x324xf32>
    %c0_1 = arith.constant 0 : index
    %c0_2 = arith.constant 0 : index
    %2 = vector.load %arg2[%c0_1, %c0_2] : memref<8x1xf32, #tpu.memory_space<vmem>>, vector<8x1xf32>
    %3 = vector.broadcast %2 : vector<8x1xf32> to vector<8x324xf32>
    %4 = arith.mulf %1, %3 : vector<8x324xf32>
    %c0_3 = arith.constant 0 : index
    %c0_4 = arith.constant 0 : index
    %5 = vector.load %arg3[%c0_3, %c0_4] : memref<8x1xf32, #tpu.memory_space<vmem>>, vector<8x1xf32>
    %6 = vector.broadcast %5 : vector<8x1xf32> to vector<8x324xf32>
    %7 = arith.addf %4, %6 : vector<8x324xf32>
    %cst = arith.constant 0.000000e+00 : f32
    %8 = vector.broadcast %cst : f32 to vector<8x324xf32>
    %9 = arith.maximumf %7, %8 : vector<8x324xf32>
    %c0_5 = arith.constant 0 : index
    %c0_6 = arith.constant 0 : index
    %c0_7 = arith.constant 0 : index
    %10 = vector.load %arg4[%c0_5, %c0_6, %c0_7] : memref<1x8x324xf32, #tpu.memory_space<vmem>>, vector<1x8x324xf32>
    %11 = vector.shape_cast %10 : vector<1x8x324xf32> to vector<8x324xf32>
    %12 = vector.shape_cast %9 : vector<8x324xf32> to vector<1x8x324xf32>
    tpu.vector_store %arg4[%c0_5, %c0_6, %c0_7], %12 {strides = array<i32>} : memref<1x8x324xf32, #tpu.memory_space<vmem>>, vector<1x8x324xf32>,
    return
  }
  func.func @transform_0(%arg0: i32) -> (i32, i32, i32) {
    %c0_i32 = arith.constant 0 : i32
    %c0_i32_0 = arith.constant 0 : i32
    %c0_i32_1 = arith.constant 0 : i32
    return %arg0, %c0_i32, %c0_i32_0 : i32, i32, i32
  }
  func.func @transform_1(%arg0: i32) -> (i32, i32) {
    %c0_i32 = arith.constant 0 : i32
    %c0_i32_0 = arith.constant 0 : i32
    %c0_i32_1 = arith.constant 0 : i32
    return %c0_i32, %c0_i32_0 : i32, i32
  }
  func.func @transform_2(%arg0: i32) -> (i32, i32) {
    %c0_i32 = arith.constant 0 : i32
    %c0_i32_0 = arith.constant 0 : i32
    %c0_i32_1 = arith.constant 0 : i32
    return %c0_i32, %c0_i32_0 : i32, i32
  }
  func.func @transform_3(%arg0: i32) -> (i32, i32, i32) {
    %c0_i32 = arith.constant 0 : i32
    %c0_i32_0 = arith.constant 0 : i32
    %c0_i32_1 = arith.constant 0 : i32
    return %arg0, %c0_i32, %c0_i32_0 : i32, i32, i32
  }
}

</mosaic_0001>

<bundles_post_ra>
// kernel: block_forward.7
= control target key start
LH: loop header
LB: loop body
LE: loop exit
PB: predicated region body
PF: predicated region fallthrough
CT: control target
= control target key end

     0   :  { %s304_s12 = smov 0   ;;  %s327_s0 = inlined_call_operand.vmem [shape: f32[2,8,580], index: 0, kind: input, shape index: {}]   ;;  %s328_s1 = inlined_call_operand.vmem [shape: f32[8,1], index: 1, kind: input, shape index: {}]   ;;  %s329_s2 = inlined_call_operand.vmem [shape: f32[8,1], index: 2, kind: input, shape index: {}]   ;;  %s330_s3 = inlined_call_operand.vmem [shape: f32[2,8,324], index: 3, kind: output, shape index: {}]  }
   0x1 LB: > { %s254_s13 = sadd.s32 4294967295, %s281_s12   ;;  %p258_p0 = scmp.ge.s32.totalorder %s281_s12, 1  ;;  %s281_s12 = sphi %s304_s12, %s13_s12  }
   0x2   : > { %p137_p1 = scmp.lt.s32.totalorder %s281_s12, 3 }
   0x4   : > { %p138_p2 = pnand %p258_p0, %p137_p1 }
   0x5   : > { %v174_v0 = vld [vmem:[%s328_s1] sm:$0xff] (!%p138_p2)  ;;  %v283_v1 = vmov (!%p138_p2), 0   ;;  %p161_p3 = scmp.lt.s32.totalorder (!%p138_p2), %s254_s13, 1  ;;  %vm197_vm0 = vcmask (!%p138_p2), 556032  }
   0x6   : > { %141 = sbr.rel (%p138_p2) target bundleno = 145 (0x91), region = 32  ;;  %274 = vset.pattern.permute.xlu0 (!%p138_p2), %v283_v1  ;;  %v183_v2 = vld [vmem:[%s329_s2] sm:$0xff] (!%p138_p2) }
   0x7   : > { %177 = vperm.xlu0 (!%p138_p2), %274, %v174_v0  }
   0xb   : > { %186 = vperm.xlu0 (!%p138_p2), %274, %v183_v2  }
   0xd   : > { %s332_s13 = smov (!%p161_p3, %s254_s13), 1 }
   0xe   : > { %s263_s18 = smul.u32 40, %s332_s13 }
   0xf   : > { %s264_s22 = smul.u32 24, %s332_s13 }
  0x10   : > { %s165_s21 = scalar_lea.vmem %s327_s0, %s263_s18 }
  0x11   : > { %v171_v4 = vld [vmem:[%s165_s21 + $0x8] sm:$0xff]  ;;  %v172_v5 = vld [vmem:[%s165_s21 + $0x10] sm:$0xff]  ;;  %v173_v6 = vld [vmem:[%s165_s21 + $0x18] sm:$0xff]  ;;  %s170_s25 = scalar_lea.vmem %s330_s3, %s264_s22 }
  0x86   : > { %v178_v3 = vpop.permute.xlu0 %177 }
  0x87   : > { %v180_v7 = vmul.f32 %v178_v3, %v171_v4  ;;  %v181_v8 = vmul.f32 %v178_v3, %v172_v5  ;;  %v182_v9 = vmul.f32 %v178_v3, %v173_v6 }
  0x8a   : > { %v187_v10 = vpop.permute.xlu0 %186 }
  0x8b   : > { %v189_v11 = vadd.f32 %v187_v10, %v180_v7  ;;  %v190_v12 = vadd.f32 %v187_v10, %v181_v8  ;;  %v191_v13 = vadd.f32 %v187_v10, %v182_v9 }
  0x8d   : > { %v192_v14 = vmax.f32 %v189_v11, 0.0  ;;  %v193_v15 = vmax.f32 %v190_v12, 0.0  ;;  %v194_v16 = vmax.f32 %v191_v13, 0.0 }
  0x8f   : > { %195 = vst [vmem:[%s170_s25] sm:$0xff] %v192_v14  ;;  %196 = vst [vmem:[%s170_s25 + $0x8] sm:$0xff] %v193_v15 }
  0x90   : > { %198 = vst.msk [vmem:[%s170_s25 + $0x10] sm:$0xff] %vm197_vm0, %v194_v16 }
  0x91 PF: > { %s13_s12 = sadd.s32 1, %s281_s12  }
  0x92   : > { %p10_p4 = scmp.ge.s32.totalorder %s13_s12, 4  }
  0x94   :  { %12 = sbr.rel (!%p10_p4) target bundleno = 1 (0x1), region = 62 }

// kernel: block_forward.5
= control target key start
LH: loop header
LB: loop body
LE: loop exit
PB: predicated region body
PF: predicated region fallthrough
CT: control target
= control target key end

     0   :  { %s2250_s24 = smov 0   ;;  %s2461_s0 = inlined_call_operand.vmem [shape: f32[2,4,580], index: 0, kind: input, shape index: {}]   ;;  %s2462_s1 = inlined_call_operand.vmem [shape: f32[4,1], index: 1, kind: input, shape index: {}]   ;;  %s2463_s2 = inlined_call_operand.vmem [shape: f32[4,1], index: 2, kind: input, shape index: {}]   ;;  %s2464_s3 = inlined_call_operand.vmem [shape: f32[9,4,4], index: 3, kind: input, shape index: {}]   ;;  %s2465_s4 = inlined_call_operand.vmem [shape: f32[1,580], index: 4, kind: input, shape index: {}]   ;;  %s2466_s5 = inlined_call_operand.vmem [shape: f32[2,4,580], index: 5, kind: output, shape index: {0}]   ;;  %s2467_s6 = inlined_call_operand.vmem [shape: f32[2,4,1], index: 6, kind: output, shape index: {1}]   ;;  %s2468_s7 = inlined_call_operand.vmem [shape: f32[2,4,1], index: 7, kind: output, shape index: {2}]  }
   0x1 LB: > { %s2009_s25 = sadd.s32 4294967295, %s2196_s24   ;;  %p2013_p0 = scmp.ge.s32.totalorder %s2196_s24, 1  ;;  %s2196_s24 = sphi %s2250_s24, %s18_s24  }
   0x2   : > { %p242_p1 = scmp.lt.s32.totalorder %s2196_s24, 3 }
   0x4   : > { %p243_p2 = pnand %p2013_p0, %p242_p1 }
   0x5   : > { %v302_v0 = vld [vmem:[%s2462_s1] sm:$0xf] (!%p243_p2)  ;;  %v2198_v1 = vmov (!%p243_p2), 0   ;;  %p282_p3 = scmp.lt.s32.totalorder (!%p243_p2), %s2009_s25, 1  ;;  %v310_v3 = vlaneseq (!%p243_p2)  ;;  %v2199_v4 = vmov (!%p243_p2), 839922192  }
   0x6   : > { %246 = sbr.rel (%p243_p2) target bundleno = 697 (0x2b9), region = 40  ;;  %2189 = vset.pattern.permute.xlu0 (!%p243_p2), %v2198_v1  ;;  %v317_v2 = vld [vmem:[%s2463_s2] sm:$0xf] (!%p243_p2)  ;;  %v308_v5 = vunpack.c.l.s4 (!%p243_p2), %v2199_v4  ;;  %v2200_v24 = vmov (!%p243_p2), 0.0   ;;  %vm2201_vm3 = vmmov (!%p243_p2), 0   ;;  %s2202_s13 = smov (!%p243_p2), 18  }
   0x7   : > { %305 = vperm.xlu0 (!%p243_p2), %2189, %v302_v0   ;;  %v2266_v6 = vshrl.u32 (!%p243_p2), %v310_v3, 7  ;;  %v334_v8 = vld [vmem:[%s2465_s4] sm:$0x1f] (!%p243_p2)  ;;  %461 = vmatprep.mubr.f32.mxu0 (!%p243_p2), %v2200_v24  ;;  %s2203_s14 = smov (!%p243_p2), 19   ;;  %s2204_s15 = smov (!%p243_p2), 17   ;;  %vm382_vm6 = vcmask (!%p243_p2), 146432  }
   0x8   : > { %v309_v7 = vunpack.c.0.s8 (!%p243_p2), %v308_v5  ;;  %vm335_vm0 = vcmp.gt.f32.partialorder (!%p243_p2), %v334_v8, 0.0  ;;  %2091 = vmatprep.subr.mxu1 (!%p243_p2), %v2200_v24  ;;  %2093 = vmatprep.mubr.msk.f32.mxu1 (!%p243_p2), %vm2201_vm3, %v2200_v24  ;;  %s2205_s16 = smov (!%p243_p2), 1   ;;  %s2206_s17 = smov (!%p243_p2), 127   ;;  %vm390_vm7 = vcmask (!%p243_p2), 1043456   ;;  %v2018_v44 = vld [vmem:[%s2464_s3 + $0x4] sm:$0xf] (!%p243_p2) }
   0x9   : > { %v347_v10 = vsub.s32 (!%p243_p2), 2, %v2266_v6  ;;  %v339_v12 = vsub.s32 (!%p243_p2), 0, %v2266_v6  ;;  %v336_v13 = vsel (!%p243_p2), %vm335_vm0, 1, %v2198_v1  ;;  %v343_v17 = vsub.s32 (!%p243_p2), 1, %v2266_v6  ;;  %s2207_s18 = smov (!%p243_p2), 111   ;;  %s2208_s19 = smov (!%p243_p2), 110  }
   0xa   : > { %v312_v9 = vsub.s32 (!%p243_p2), %v309_v7, %v2266_v6  ;;  %v351_v27 = vsub.s32 (!%p243_p2), 3, %v2266_v6  ;;  %s2209_s20 = smov (!%p243_p2), 109   ;;  %vm386_vm8 = vcmask (!%p243_p2), 31744   ;;  %vm546_vm9 = vcmask (!%p243_p2), 154624   ;;  %v367_v51 = vld [vmem:[%s2464_s3] sm:$0xf] (!%p243_p2) }
   0xb   : > { %320 = vperm.xlu0 (!%p243_p2), %2189, %v317_v2   ;;  %v348_v18 = vrot.slane (!%p243_p2), %v336_v13, %v347_v10  ;;  %v340_v20 = vrot.slane (!%p243_p2), %v336_v13, %v339_v12  ;;  %v344_v28 = vrot.slane (!%p243_p2), %v336_v13, %v343_v17  ;;  %vm710_vm10 = vcmask (!%p243_p2), 138240   ;;  %v2029_v59 = vld [vmem:[%s2464_s3 + $0x8] sm:$0xf] (!%p243_p2)  ;;  %v2035_v3 = vld [vmem:[%s2464_s3 + $0xc] sm:$0xf] (!%p243_p2) }
   0xc   : > { %v352_v34 = vrot.slane (!%p243_p2), %v336_v13, %v351_v27  ;;  %vm877_vm11 = vcmask (!%p243_p2), 7168   ;;  %vm1197_vm12 = vcmask (!%p243_p2), 1039360   ;;  %v2041_v13 = vld [vmem:[%s2464_s3 + $0x10] sm:$0xf] (!%p243_p2)  ;;  %vm1361_vm13 = vcmask (!%p243_p2), 908288  }
   0xd   : > { %s2470_s25 = smov (!%p282_p3, %s2009_s25), 1  ;;  %vm355_vm1 = vcmp.eq.s32.totalorder %v348_v18, 1  ;;  %vm353_vm2 = vcmp.eq.s32.totalorder %v340_v20, 1  ;;  %vm354_vm4 = vcmp.eq.s32.totalorder %v344_v28, 1  ;;  %vm1525_vm14 = vcmask 900096  }
   0xe   : > { %s2168_s9 = smul.u32 20, %s2470_s25  ;;  %vm356_vm5 = vcmp.eq.s32.totalorder %v352_v34, 1  ;;  %v2053_v27 = vld [vmem:[%s2464_s3 + $0x18] sm:$0xf]  ;;  %vm1689_vm15 = vcmask 891904   ;;  %vm1868_vm0 = vcmask 551936  }
  0x10   : > { %s286_s12 = scalar_lea.vmem %s2461_s0, %s2168_s9  ;;  %s291_s23 = scalar_lea.vmem %s2466_s5, %s2168_s9 }
  0x11   : > { %v300_v15 = vld [vmem:[%s286_s12] sm:$0xff]  ;;  %v301_v16 = vld [vmem:[%s286_s12 + $0x8] sm:$0xff]  ;;  %s2016_s9 = sshll.u32 %s2470_s25, 2 }
  0x12   : > { %s295_s28 = scalar_lea.vmem %s2467_s6, %s2016_s9  ;;  %s299_s8 = scalar_lea.vmem %s2468_s7, %s2016_s9 }
  0x86   : > { %v306_v11 = vpop.permute.xlu0 %305 }
  0x87   : > { %v313_v14 = vrot.slane %v306_v11, %v312_v9 }
  0x89   : > { %v315_v21 = vmul.f32 %v313_v14, %v300_v15  ;;  %v316_v22 = vmul.f32 %v313_v14, %v301_v16 }
  0x8a   : > { %v321_v19 = vpop.permute.xlu0 %320 }
  0x8b   : > { %v328_v23 = vrot.slane %v321_v19, %v312_v9 }
  0x8d   : > { %v330_v25 = vadd.f32 %v328_v23, %v315_v21  ;;  %v331_v26 = vadd.f32 %v328_v23, %v316_v22  ;;  %v2047_v21 = vld [vmem:[%s2464_s3 + $0x14] sm:$0xf] }
  0x8f   : > { %v332_v29 = vmax.f32 %v330_v25, 0.0  ;;  %v333_v30 = vmax.f32 %v331_v26, 0.0 }
  0x91   : > { %v359_v31 = vcombine.high %v332_v29, %v332_v29  ;;  %v2292_v32 = vsel %vm355_vm1, %v333_v30, 0.0  ;;  %v363_v33 = vsel %vm353_vm2, %v332_v29, 0.0  ;;  %v360_v35 = vcombine.high %v333_v30, %v333_v30 }
  0x92   : > { %378 = vrot.lane.b32.xlu1 %v2292_v32, %s2202_s13  ;;  %374 = vrot.lane.b32.xlu0 %v363_v33, %s2202_s13  ;;  %vm1873_vm1 = vcmask 3072  }
  0x93   : > { %v2295_v36 = vsel %vm354_vm4, %v359_v31, 0.0  ;;  %v2299_v37 = vsel %vm356_vm5, %v360_v35, 0.0  ;;  %v2065_v35 = vld [vmem:[%s2464_s3 + $0x20] sm:$0xf] }
  0x96   : > { %540 = vrot.lane.b32.xlu0 %v2295_v36, %s2203_s14  ;;  %376 = vrot.lane.b32.xlu1 %v2295_v36, %s2202_s13 }
  0x9a   : > { %538 = vrot.lane.b32.xlu0 %v363_v33, %s2203_s14  ;;  %380 = vrot.lane.b32.xlu1 %v2299_v37, %s2202_s13 }
  0x9e   : > { %704 = vrot.lane.b32.xlu0 %v2295_v36, %s2204_s15  ;;  %542 = vrot.lane.b32.xlu1 %v2292_v32, %s2203_s14 }
  0xa2   : > { %702 = vrot.lane.b32.xlu0 %v363_v33, %s2204_s15  ;;  %544 = vrot.lane.b32.xlu1 %v2299_v37, %s2203_s14 }
  0xa6   : > { %871 = vrot.lane.b32.xlu0 %v2295_v36, %s2205_s16  ;;  %706 = vrot.lane.b32.xlu1 %v2292_v32, %s2204_s15 }
  0xaa   : > { %869 = vrot.lane.b32.xlu0 %v363_v33, %s2205_s16  ;;  %708 = vrot.lane.b32.xlu1 %v2299_v37, %s2204_s15  ;;  %v2059_v33 = vld [vmem:[%s2464_s3 + $0x1c] sm:$0xf] }
  0xae   : > { %1193 = vrot.lane.b32.xlu0 %v2292_v32, %s2206_s17  ;;  %873 = vrot.lane.b32.xlu1 %v2292_v32, %s2205_s16 }
  0xb2   : > { %1191 = vrot.lane.b32.xlu0 %v2295_v36, %s2206_s17  ;;  %875 = vrot.lane.b32.xlu1 %v2299_v37, %s2205_s16 }
  0xb6   : > { %1359 = vrot.lane.b32.xlu0 %v2299_v37, %s2207_s18  ;;  %1195 = vrot.lane.b32.xlu1 %v2299_v37, %s2206_s17 }
  0xba   : > { %1521 = vrot.lane.b32.xlu0 %v2292_v32, %s2208_s19  ;;  %1357 = vrot.lane.b32.xlu1 %v2292_v32, %s2207_s18 }
  0xbe   : > { %1519 = vrot.lane.b32.xlu0 %v2295_v36, %s2208_s19  ;;  %1355 = vrot.lane.b32.xlu1 %v2295_v36, %s2207_s18 }
  0xc2   : > { %1687 = vrot.lane.b32.xlu0 %v2299_v37, %s2209_s20  ;;  %1523 = vrot.lane.b32.xlu1 %v2299_v37, %s2208_s19 }
  0xc6   : > { %1685 = vrot.lane.b32.xlu1 %v2292_v32, %s2209_s20 }
  0xca   : > { %1683 = vrot.lane.b32.xlu1 %v2295_v36, %s2209_s20 }
 0x104   : > { %v379_v38 = vpop.permute.xlu1 %378  ;;  %v375_v39 = vpop.permute.xlu0 %374 }
 0x108   : > { %v541_v40 = vpop.permute.xlu0 %540  ;;  %v377_v41 = vpop.permute.xlu1 %376 }
 0x109   : > { %v384_v42 = vsel %vm382_vm6, %v377_v41, %v379_v38  ;;  %v383_v43 = vsel %vm382_vm6, %v375_v39, %v377_v41 }
 0x10a   : > { %2019 = vmatprep.subr.msk.mxu0 %vm390_vm7, %v384_v42 }
 0x10b   : > { %2020 = vmatpush1.msk.msra.mxu0 %vm390_vm7, %v383_v43 }
 0x10c   : > { %v539_v45 = vpop.permute.xlu0 %538  ;;  %2021 = vmatmul.mubr.msk.f32.vlgmr.msra.gmra.mrb[0].mxu0 %vm386_vm8, %v2018_v44  ;;  %v381_v46 = vpop.permute.xlu1 %380 }
 0x10d   : > { %v385_v47 = vsel %vm382_vm6, %v379_v38, %v381_v46  ;;  %623 = vmatprep.mubr.f32.mxu0 %v2200_v24  ;;  %v547_v52 = vsel %vm546_vm9, %v539_v45, %v541_v40 }
 0x10e   : > { %2092 = vmatpush3.msk.msra.mxu1 %vm390_vm7, %v385_v47 }
 0x10f   : > { %2094 = vmatmul.mubr.msk.f32.vlgmr.msra.gmra.mrb[0].mxu1 %vm386_vm8, %v2018_v44  ;;  %2096 = vmatprep.subr.mxu1 %v2200_v24 }
 0x110   : > { %v705_v48 = vpop.permute.xlu0 %704  ;;  %v543_v49 = vpop.permute.xlu1 %542  ;;  %2098 = vmatprep.mubr.msk.f32.mxu1 %vm2201_vm3, %v2200_v24 }
 0x111   : > { %v548_v50 = vsel %vm546_vm9, %v541_v40, %v543_v49 }
 0x112   : > { %2024 = vmatprep.subr.msk.mxu0 %vm390_vm7, %v548_v50 }
 0x113   : > { %2025 = vmatpush1.msk.msra.mxu0 %vm390_vm7, %v547_v52 }
 0x114   : > { %v703_v53 = vpop.permute.xlu0 %702  ;;  %2026 = vmatmul.mubr.msk.f32.vlgmr.msra.gmra.mrb[0].mxu0 %vm386_vm8, %v367_v51  ;;  %v545_v54 = vpop.permute.xlu1 %544 }
 0x115   : > { %v549_v55 = vsel %vm546_vm9, %v543_v49, %v545_v54  ;;  %787 = vmatprep.mubr.f32.mxu0 %v2200_v24  ;;  %v711_v60 = vsel %vm710_vm10, %v703_v53, %v705_v48 }
 0x116   : > { %2097 = vmatpush3.msk.msra.mxu1 %vm390_vm7, %v549_v55 }
 0x117   : > { %2099 = vmatmul.mubr.msk.f32.vlgmr.msra.gmra.mrb[0].mxu1 %vm386_vm8, %v367_v51  ;;  %2101 = vmatprep.subr.mxu1 %v2200_v24 }
 0x118   : > { %v872_v56 = vpop.permute.xlu0 %871  ;;  %v707_v57 = vpop.permute.xlu1 %706  ;;  %2103 = vmatprep.mubr.msk.f32.mxu1 %vm2201_vm3, %v2200_v24 }
 0x119   : > { %v712_v58 = vsel %vm710_vm10, %v705_v48, %v707_v57 }
 0x11a   : > { %2030 = vmatprep.subr.msk.mxu0 %vm390_vm7, %v712_v58 }
 0x11b   : > { %2031 = vmatpush1.msk.msra.mxu0 %vm390_vm7, %v711_v60 }
 0x11c   : > { %v870_v61 = vpop.permute.xlu0 %869  ;;  %2032 = vmatmul.mubr.msk.f32.vlgmr.msra.gmra.mrb[0].mxu0 %vm386_vm8, %v2029_v59  ;;  %v709_v62 = vpop.permute.xlu1 %708 }
 0x11d   : > { %v713_v63 = vsel %vm710_vm10, %v707_v57, %v709_v62  ;;  %954 = vmatprep.mubr.f32.mxu0 %v2200_v24  ;;  %v878_v4 = vsel %vm877_vm11, %v870_v61, %v872_v56 }
 0x11e   : > { %2102 = vmatpush3.msk.msra.mxu1 %vm390_vm7, %v713_v63 }
 0x11f   : > { %2104 = vmatmul.mubr.msk.f32.vlgmr.msra.gmra.mrb[0].mxu1 %vm386_vm8, %v2029_v59  ;;  %2106 = vmatprep.subr.mxu1 %v2200_v24 }
 0x120   : > { %v1194_v0 = vpop.permute.xlu0 %1193  ;;  %v874_v1 = vpop.permute.xlu1 %873  ;;  %2108 = vmatprep.mubr.msk.f32.mxu1 %vm2201_vm3, %v2200_v24 }
 0x121   : > { %v879_v2 = vsel %vm877_vm11, %v872_v56, %v874_v1 }
 0x122   : > { %2036 = vmatprep.subr.msk.mxu0 %vm390_vm7, %v879_v2 }
 0x123   : > { %2037 = vmatpush1.msk.msra.mxu0 %vm390_vm7, %v878_v4 }
 0x124   : > { %v1192_v5 = vpop.permute.xlu0 %1191  ;;  %2038 = vmatmul.mubr.msk.f32.vlgmr.msra.gmra.mrb[0].mxu0 %vm386_vm8, %v2035_v3  ;;  %2042 = vmatprep.subr.msk.mxu0 %vm390_vm7, %v2292_v32  ;;  %v876_v7 = vpop.permute.xlu1 %875 }
 0x125   : > { %v880_v8 = vsel %vm877_vm11, %v874_v1, %v876_v7  ;;  %2043 = vmatpush1.msk.msra.mxu0 %vm390_vm7, %v2295_v36  ;;  %1109 = vmatprep.mubr.f32.mxu0 %v2200_v24  ;;  %v1198_v15 = vsel %vm1197_vm12, %v1192_v5, %v1194_v0  ;;  %v1845_v36 = vld [vmem:[%s2465_s4 + $0x1] sm:$0x7] }
 0x126   : > { %2107 = vmatpush3.msk.msra.mxu1 %vm390_vm7, %v880_v8  ;;  %v1854_v38 = vrot.slane %v1845_v36, %v343_v17 }
 0x127   : > { %2109 = vmatmul.mubr.msk.f32.vlgmr.msra.gmra.mrb[0].mxu1 %vm386_vm8, %v2035_v3  ;;  %2111 = vmatprep.subr.mxu1 %v2200_v24 }
 0x128   : > { %2112 = vmatpush3.msk.msra.mxu1 %vm390_vm7, %v2299_v37  ;;  %v1196_v9 = vpop.permute.xlu1 %1195  ;;  %2113 = vmatprep.mubr.msk.f32.mxu1 %vm2201_vm3, %v2200_v24  ;;  %v1360_v14 = vpop.permute.xlu0 %1359  ;;  %v1850_v37 = vrot.slane %v1845_v36, %v339_v12 }
 0x129   : > { %v1199_v11 = vsel %vm1197_vm12, %v1194_v0, %v1196_v9  ;;  %2116 = vmatprep.subr.mxu1 %v2200_v24 }
 0x12a   : > { %2048 = vmatprep.subr.msk.mxu0 %vm390_vm7, %v1199_v11 }
 0x12c   : > { %2044 = vmatmul.mubr.msk.f32.vlgmr.msra.gmra.mrb[0].mxu0 %vm386_vm8, %v2041_v13  ;;  %v1358_v16 = vpop.permute.xlu1 %1357  ;;  %v1522_v19 = vpop.permute.xlu0 %1521 }
 0x12d   : > { %2049 = vmatpush1.msk.msra.mxu0 %vm390_vm7, %v1198_v15  ;;  %v1363_v18 = vsel %vm1361_vm13, %v1358_v16, %v1360_v14  ;;  %1273 = vmatprep.mubr.f32.mxu0 %v2200_v24 }
 0x12e   : > { %2054 = vmatprep.subr.msk.mxu0 %vm390_vm7, %v1363_v18 }
 0x12f   : > { %2114 = vmatmul.mubr.msk.f32.vlgmr.msra.gmra.mrb[0].mxu1 %vm386_vm8, %v2041_v13 }
 0x130   : > { %2117 = vmatpush3.msk.msra.mxu1 %vm390_vm7, %v1196_v9  ;;  %v1356_v20 = vpop.permute.xlu1 %1355  ;;  %2118 = vmatprep.mubr.msk.f32.mxu1 %vm2201_vm3, %v2200_v24  ;;  %v1520_v26 = vpop.permute.xlu0 %1519 }
 0x131   : > { %2121 = vmatprep.subr.mxu1 %v2200_v24  ;;  %v1362_v22 = vsel %vm1361_vm13, %v1356_v20, %v1358_v16  ;;  %v1526_v29 = vsel %vm1525_vm14, %v1520_v26, %v1522_v19 }
 0x134   : > { %2050 = vmatmul.mubr.msk.f32.vlgmr.msra.gmra.mrb[0].mxu0 %vm386_vm8, %v2047_v21  ;;  %v1524_v23 = vpop.permute.xlu1 %1523  ;;  %v1688_v30 = vpop.permute.xlu0 %1687 }
 0x135   : > { %2055 = vmatpush1.msk.msra.mxu0 %vm390_vm7, %v1362_v22  ;;  %v1527_v25 = vsel %vm1525_vm14, %v1522_v19, %v1524_v23  ;;  %1437 = vmatprep.mubr.f32.mxu0 %v2200_v24 }
 0x136   : > { %2060 = vmatprep.subr.msk.mxu0 %vm390_vm7, %v1527_v25 }
 0x137   : > { %2119 = vmatmul.mubr.msk.f32.vlgmr.msra.gmra.mrb[0].mxu1 %vm386_vm8, %v2047_v21 }
 0x138   : > { %2122 = vmatpush3.msk.msra.mxu1 %vm390_vm7, %v1360_v14  ;;  %2123 = vmatprep.mubr.msk.f32.mxu1 %vm2201_vm3, %v2200_v24  ;;  %v1686_v28 = vpop.permute.xlu1 %1685 }
 0x139   : > { %2126 = vmatprep.subr.mxu1 %v2200_v24  ;;  %v1691_v31 = vsel %vm1689_vm15, %v1686_v28, %v1688_v30 }
 0x13c   : > { %2056 = vmatmul.mubr.msk.f32.vlgmr.msra.gmra.mrb[0].mxu0 %vm386_vm8, %v2053_v27  ;;  %v1684_v32 = vpop.permute.xlu1 %1683 }
 0x13d   : > { %2061 = vmatpush1.msk.msra.mxu0 %vm390_vm7, %v1526_v29  ;;  %1601 = vmatprep.mubr.f32.mxu0 %v2200_v24  ;;  %v1690_v34 = vsel %vm1689_vm15, %v1684_v32, %v1686_v28 }
 0x13e   : > { %2066 = vmatprep.subr.msk.mxu0 %vm390_vm7, %v1691_v31 }
 0x13f   : > { %2124 = vmatmul.mubr.msk.f32.vlgmr.msra.gmra.mrb[0].mxu1 %vm386_vm8, %v2053_v27 }
 0x140   : > { %2127 = vmatpush3.msk.msra.mxu1 %vm390_vm7, %v1524_v23  ;;  %2128 = vmatprep.mubr.msk.f32.mxu1 %vm2201_vm3, %v2200_v24 }
 0x141   : > { %2131 = vmatprep.subr.mxu1 %v2200_v24 }
 0x144   : > { %2062 = vmatmul.mubr.msk.f32.vlgmr.msra.gmra.mrb[0].mxu0 %vm386_vm8, %v2059_v33 }
 0x145   : > { %2067 = vmatpush1.msk.msra.mxu0 %vm390_vm7, %v1690_v34  ;;  %1765 = vmatprep.mubr.f32.mxu0 %v2200_v24 }
 0x147   : > { %2129 = vmatmul.mubr.msk.f32.vlgmr.msra.gmra.mrb[0].mxu1 %vm386_vm8, %v2059_v33 }
 0x148   : > { %2132 = vmatpush3.msk.msra.mxu1 %vm390_vm7, %v1688_v30  ;;  %2133 = vmatprep.mubr.msk.f32.mxu1 %vm2201_vm3, %v2200_v24  ;;  %v1858_v24 = vrot.slane %v1845_v36, %v347_v10 }
 0x14c   : > { %2068 = vmatmul.mubr.msk.f32.vlgmr.msra.gmra.mrb[0].mxu0 %vm386_vm8, %v2065_v35 }
 0x14f   : > { %2134 = vmatmul.mubr.msk.f32.vlgmr.msra.gmra.mrb[0].mxu1 %vm386_vm8, %v2065_v35 }
 0x21f   : > { %v1767_v39 = vpop.f32.mrb[0].mxu0 }
 0x220   : > { %v1862_v40 = vmul.f32 %v1850_v37, %v1767_v39  ;;  %v1769_v41 = vpop.f32.mrb[1].mxu0 }
 0x221   : > { %v1863_v42 = vmul.f32 %v1854_v38, %v1769_v41 }
 0x222   : > { %v1875_v43 = vmul.f32 %v1862_v40, %v1862_v40  ;;  %v1838_v44 = vpop.f32.mrb[0].mxu1  ;;  %v1865_v45 = vsel %vm390_vm7, %v1862_v40, 0.0 }
 0x223   : > { %v1876_v12 = vmul.f32 %v1863_v42, %v1863_v42  ;;  %v1888_v46 = vcombine.low %v1862_v40, %v1863_v42  ;;  %v1864_v17 = vmul.f32 %v1858_v24, %v1838_v44  ;;  %v2135_v47 = vpop.f32.mrb[1].mxu1  ;;  %v1866_v6 = vsel %vm390_vm7, %v1863_v42, 0.0 }
 0x224   : > { %v1867_v10 = vadd.f32 %v1866_v6, %v1865_v45  ;;  %v1878_v48 = vsel %vm390_vm7, %v1875_v43, 0.0 }
 0x225   : > { %1890 = vst [vmem:[%s291_s23 + $0x4] sm:$0xff] %v1888_v46  ;;  %v1869_v49 = vsel %vm1868_vm0, %v1864_v17, 0.0  ;;  %1891 = vst.msk [vmem:[%s291_s23 + $0xc] sm:$0xf] %vm1868_vm0, %v1864_v17  ;;  %v1877_v50 = vmul.f32 %v1864_v17, %v1864_v17  ;;  %v1879_v51 = vsel %vm390_vm7, %v1876_v12, 0.0 }
 0x226   : > { %v1870_v52 = vadd.f32 %v1869_v49, %v1867_v10  ;;  %v1880_v53 = vadd.f32 %v1879_v51, %v1878_v48 }
 0x227   : > { %v1881_v54 = vsel %vm1868_vm0, %v1877_v50, 0.0 }
 0x228   : > { %1871 = vadd.xlane.f32.xlu0 %v1870_v52  ;;  %v1882_v55 = vadd.f32 %v1881_v54, %v1880_v53 }
 0x22a   : > { %1883 = vadd.xlane.f32.xlu1 %v1882_v55 }
 0x2b5   : > { %v1872_v56 = vpop.xlane.xlu0 %1871 }
 0x2b6   : > { %1874 = vst.msk [vmem:[%s295_s28] sm:$0xf] %vm1873_vm1, %v1872_v56 }
 0x2b7   : > { %v1884_v57 = vpop.xlane.xlu1 %1883 }
 0x2b8   : > { %1885 = vst.msk [vmem:[%s299_s8] sm:$0xf] %vm1873_vm1, %v1884_v57 }
 0x2b9 PF: > { %s18_s24 = sadd.s32 1, %s2196_s24  }
 0x2ba   : > { %p15_p4 = scmp.ge.s32.totalorder %s18_s24, 4  }
 0x2bc   :  { %17 = sbr.rel (!%p15_p4) target bundleno = 1 (0x1), region = 102 }

// kernel: block_forward.6
= control target key start
LH: loop header
LB: loop body
LE: loop exit
PB: predicated region body
PF: predicated region fallthrough
CT: control target
= control target key end

     0   :  { %s2314_s27 = smov 0   ;;  %s2526_s0 = inlined_call_operand.vmem [shape: f32[2,4,580], index: 0, kind: input, shape index: {}]   ;;  %s2527_s1 = inlined_call_operand.vmem [shape: f32[2,4,580], index: 1, kind: input, shape index: {}]   ;;  %s2528_s2 = inlined_call_operand.vmem [shape: f32[4,1], index: 2, kind: input, shape index: {}]   ;;  %s2529_s3 = inlined_call_operand.vmem [shape: f32[4,1], index: 3, kind: input, shape index: {}]   ;;  %s2530_s4 = inlined_call_operand.vmem [shape: f32[9,8,4], index: 4, kind: input, shape index: {}]   ;;  %s2531_s5 = inlined_call_operand.vmem [shape: f32[1,580], index: 5, kind: input, shape index: {}]   ;;  %s2532_s6 = inlined_call_operand.vmem [shape: f32[2,8,580], index: 6, kind: output, shape index: {0}]   ;;  %s2533_s7 = inlined_call_operand.vmem [shape: f32[2,8,1], index: 7, kind: output, shape index: {1}]   ;;  %s2534_s8 = inlined_call_operand.vmem [shape: f32[2,8,1], index: 8, kind: output, shape index: {2}]  }
   0x1 LB: > { %s2066_s28 = sadd.s32 4294967295, %s2255_s27   ;;  %p2070_p0 = scmp.ge.s32.totalorder %s2255_s27, 1  ;;  %s2255_s27 = sphi %s2314_s27, %s19_s27  }
   0x2   : > { %p277_p1 = scmp.lt.s32.totalorder %s2255_s27, 3 }
   0x4   : > { %p278_p2 = pnand %p2070_p0, %p277_p1 }
   0x5   : > { %v349_v0 = vld [vmem:[%s2528_s2] sm:$0xf] (!%p278_p2)  ;;  %v2257_v1 = vmov (!%p278_p2), 0   ;;  %p324_p3 = scmp.lt.s32.totalorder (!%p278_p2), %s2066_s28, 1  ;;  %v357_v3 = vlaneseq (!%p278_p2)  ;;  %v2258_v4 = vmov (!%p278_p2), 839922192  }
   0x6   : > { %281 = sbr.rel (%p278_p2) target bundleno = 701 (0x2bd), region = 44  ;;  %2248 = vset.pattern.permute.xlu0 (!%p278_p2), %v2257_v1  ;;  %v364_v2 = vld [vmem:[%s2529_s3] sm:$0xf] (!%p278_p2)  ;;  %v355_v5 = vunpack.c.l.s4 (!%p278_p2), %v2258_v4  ;;  %v2259_v30 = vmov (!%p278_p2), 0.0   ;;  %vm2260_vm3 = vmmov (!%p278_p2), 0   ;;  %s2261_s20 = smov (!%p278_p2), 18  }
   0x7   : > { %352 = vperm.xlu0 (!%p278_p2), %2248, %v349_v0   ;;  %v2330_v6 = vshrl.u32 (!%p278_p2), %v357_v3, 7  ;;  %v387_v9 = vld [vmem:[%s2531_s5] sm:$0x1f] (!%p278_p2)  ;;  %514 = vmatprep.mubr.f32.mxu0 (!%p278_p2), %v2259_v30  ;;  %s2262_s21 = smov (!%p278_p2), 19   ;;  %s2263_s22 = smov (!%p278_p2), 17   ;;  %vm435_vm6 = vcmask (!%p278_p2), 146432  }
   0x8   : > { %v356_v7 = vunpack.c.0.s8 (!%p278_p2), %v355_v5  ;;  %vm388_vm0 = vcmp.gt.f32.partialorder (!%p278_p2), %v387_v9, 0.0  ;;  %2149 = vmatprep.subr.mxu1 (!%p278_p2), %v2259_v30  ;;  %2151 = vmatprep.mubr.msk.f32.mxu1 (!%p278_p2), %vm2260_vm3, %v2259_v30  ;;  %s2264_s23 = smov (!%p278_p2), 1   ;;  %s2265_s24 = smov (!%p278_p2), 127   ;;  %vm443_vm7 = vcmask (!%p278_p2), 1043456   ;;  %v2076_v50 = vld [vmem:[%s2530_s4 + $0x8] sm:$0xff] (!%p278_p2)  ;;  %vm439_vm8 = vcmask (!%p278_p2), 31744  }
   0x9   : > { %v400_v14 = vsub.s32 (!%p278_p2), 2, %v2330_v6  ;;  %v392_v16 = vsub.s32 (!%p278_p2), 0, %v2330_v6  ;;  %v389_v17 = vsel (!%p278_p2), %vm388_vm0, 1, %v2257_v1  ;;  %v396_v23 = vsub.s32 (!%p278_p2), 1, %v2330_v6  ;;  %s2266_s25 = smov (!%p278_p2), 111   ;;  %s2267_s26 = smov (!%p278_p2), 110  }
   0xa   : > { %v359_v8 = vsub.s32 (!%p278_p2), %v356_v7, %v2330_v6  ;;  %v404_v33 = vsub.s32 (!%p278_p2), 3, %v2330_v6  ;;  %s2268_s29 = smov (!%p278_p2), 109   ;;  %vm599_vm9 = vcmask (!%p278_p2), 154624   ;;  %v420_v57 = vld [vmem:[%s2530_s4] sm:$0xff] (!%p278_p2)  ;;  %vm763_vm10 = vcmask (!%p278_p2), 138240   ;;  %v2087_v1 = vld [vmem:[%s2530_s4 + $0x10] sm:$0xff] (!%p278_p2) }
   0xb   : > { %367 = vperm.xlu0 (!%p278_p2), %2248, %v364_v2   ;;  %v401_v24 = vrot.slane (!%p278_p2), %v389_v17, %v400_v14  ;;  %v393_v27 = vrot.slane (!%p278_p2), %v389_v17, %v392_v16  ;;  %v397_v34 = vrot.slane (!%p278_p2), %v389_v17, %v396_v23  ;;  %vm930_vm11 = vcmask (!%p278_p2), 7168  }
   0xc   : > { %v405_v40 = vrot.slane (!%p278_p2), %v389_v17, %v404_v33  ;;  %vm1250_vm12 = vcmask (!%p278_p2), 1039360   ;;  %vm1414_vm13 = vcmask (!%p278_p2), 908288   ;;  %vm1578_vm14 = vcmask (!%p278_p2), 900096   ;;  %v2111_v33 = vld [vmem:[%s2530_s4 + $0x30] sm:$0xff] (!%p278_p2) }
   0xd   : > { %s2536_s28 = smov (!%p324_p3, %s2066_s28), 1  ;;  %vm408_vm1 = vcmp.eq.s32.totalorder %v401_v24, 1  ;;  %vm406_vm2 = vcmp.eq.s32.totalorder %v393_v27, 1  ;;  %vm407_vm4 = vcmp.eq.s32.totalorder %v397_v34, 1  ;;  %v2105_v27 = vld [vmem:[%s2530_s4 + $0x28] sm:$0xff]  ;;  %vm1742_vm15 = vcmask 891904  }
   0xe   : > { %s2226_s11 = smul.u32 20, %s2536_s28  ;;  %vm409_vm5 = vcmp.eq.s32.totalorder %v405_v40, 1  ;;  %vm1919_vm0 = vcmask 556032   ;;  %s2074_s12 = sshll.u32 %s2536_s28, 3 }
   0xf   : > { %s2227_s30 = smul.u32 40, %s2536_s28  ;;  %s342_s15 = scalar_lea.vmem %s2533_s7, %s2074_s12 }
  0x10   : > { %s328_s16 = scalar_lea.vmem %s2526_s0, %s2226_s11  ;;  %s333_s19 = scalar_lea.vmem %s2527_s1, %s2226_s11 }
  0x11   : > { %v347_v12 = vld [vmem:[%s328_s16] sm:$0xff]  ;;  %v348_v13 = vld [vmem:[%s328_s16 + $0x8] sm:$0xff]  ;;  %s338_s11 = scalar_lea.vmem %s2532_s6, %s2227_s30  ;;  %s346_s18 = scalar_lea.vmem %s2534_s8, %s2074_s12 }
  0x12   : > { %v381_v25 = vld [vmem:[%s333_s19] sm:$0xff]  ;;  %v382_v26 = vld [vmem:[%s333_s19 + $0x8] sm:$0xff] }
  0x86   : > { %v353_v10 = vpop.permute.xlu0 %352 }
  0x87   : > { %v360_v11 = vrot.slane %v353_v10, %v359_v8  ;;  %v2093_v10 = vld [vmem:[%s2530_s4 + $0x18] sm:$0xff] }
  0x89   : > { %v362_v18 = vmul.f32 %v360_v11, %v347_v12  ;;  %v363_v19 = vmul.f32 %v360_v11, %v348_v13 }
  0x8a   : > { %v368_v15 = vpop.permute.xlu0 %367 }
  0x8b   : > { %v375_v20 = vrot.slane %v368_v15, %v359_v8 }
  0x8d   : > { %v377_v21 = vadd.f32 %v375_v20, %v362_v18  ;;  %v378_v22 = vadd.f32 %v375_v20, %v363_v19  ;;  %v2099_v19 = vld [vmem:[%s2530_s4 + $0x20] sm:$0xff] }
  0x8f   : > { %v379_v28 = vmax.f32 %v377_v21, 0.0  ;;  %v380_v29 = vmax.f32 %v378_v22, 0.0 }
  0x91   : > { %v383_v31 = vadd.f32 %v381_v25, %v379_v28  ;;  %v384_v32 = vadd.f32 %v382_v26, %v380_v29 }
  0x93   : > { %v386_v35 = vmax.f32 %v384_v32, 0.0  ;;  %v385_v36 = vmax.f32 %v383_v31, 0.0 }
  0x95   : > { %v2357_v37 = vsel %vm408_vm1, %v386_v35, 0.0  ;;  %v416_v38 = vsel %vm406_vm2, %v385_v36, 0.0  ;;  %v412_v39 = vcombine.high %v385_v36, %v385_v36  ;;  %v413_v41 = vcombine.high %v386_v35, %v386_v35 }
  0x96   : > { %431 = vrot.lane.b32.xlu1 %v2357_v37, %s2261_s20  ;;  %427 = vrot.lane.b32.xlu0 %v416_v38, %s2261_s20 }
  0x97   : > { %v2360_v42 = vsel %vm407_vm4, %v412_v39, 0.0  ;;  %v2364_v43 = vsel %vm409_vm5, %v413_v41, 0.0  ;;  %v2117_v39 = vld [vmem:[%s2530_s4 + $0x38] sm:$0xff]  ;;  %v2123_v41 = vld [vmem:[%s2530_s4 + $0x40] sm:$0xff] }
  0x9a   : > { %593 = vrot.lane.b32.xlu0 %v2360_v42, %s2262_s21  ;;  %429 = vrot.lane.b32.xlu1 %v2360_v42, %s2261_s20 }
  0x9e   : > { %591 = vrot.lane.b32.xlu0 %v416_v38, %s2262_s21  ;;  %433 = vrot.lane.b32.xlu1 %v2364_v43, %s2261_s20 }
  0xa2   : > { %757 = vrot.lane.b32.xlu0 %v2360_v42, %s2263_s22  ;;  %595 = vrot.lane.b32.xlu1 %v2357_v37, %s2262_s21 }
  0xa6   : > { %755 = vrot.lane.b32.xlu0 %v416_v38, %s2263_s22  ;;  %597 = vrot.lane.b32.xlu1 %v2364_v43, %s2262_s21 }
  0xaa   : > { %924 = vrot.lane.b32.xlu0 %v2360_v42, %s2264_s23  ;;  %759 = vrot.lane.b32.xlu1 %v2357_v37, %s2263_s22 }
  0xae   : > { %922 = vrot.lane.b32.xlu0 %v416_v38, %s2264_s23  ;;  %761 = vrot.lane.b32.xlu1 %v2364_v43, %s2263_s22 }
  0xb2   : > { %1246 = vrot.lane.b32.xlu0 %v2357_v37, %s2265_s24  ;;  %926 = vrot.lane.b32.xlu1 %v2357_v37, %s2264_s23 }
  0xb6   : > { %1244 = vrot.lane.b32.xlu0 %v2360_v42, %s2265_s24  ;;  %928 = vrot.lane.b32.xlu1 %v2364_v43, %s2264_s23 }
  0xba   : > { %1412 = vrot.lane.b32.xlu0 %v2364_v43, %s2266_s25  ;;  %1248 = vrot.lane.b32.xlu1 %v2364_v43, %s2265_s24 }
  0xbe   : > { %1574 = vrot.lane.b32.xlu0 %v2357_v37, %s2267_s26  ;;  %1410 = vrot.lane.b32.xlu1 %v2357_v37, %s2266_s25 }
  0xc2   : > { %1572 = vrot.lane.b32.xlu0 %v2360_v42, %s2267_s26  ;;  %1408 = vrot.lane.b32.xlu1 %v2360_v42, %s2266_s25 }
  0xc6   : > { %1740 = vrot.lane.b32.xlu0 %v2364_v43, %s2268_s29  ;;  %1576 = vrot.lane.b32.xlu1 %v2364_v43, %s2267_s26 }
  0xca   : > { %1738 = vrot.lane.b32.xlu1 %v2357_v37, %s2268_s29 }
  0xce   : > { %1736 = vrot.lane.b32.xlu1 %v2360_v42, %s2268_s29 }
 0x108   : > { %v432_v44 = vpop.permute.xlu1 %431  ;;  %v428_v45 = vpop.permute.xlu0 %427 }
 0x10c   : > { %v594_v46 = vpop.permute.xlu0 %593  ;;  %v430_v47 = vpop.permute.xlu1 %429 }
 0x10d   : > { %v437_v48 = vsel %vm435_vm6, %v430_v47, %v432_v44  ;;  %v436_v49 = vsel %vm435_vm6, %v428_v45, %v430_v47 }
 0x10e   : > { %2077 = vmatprep.subr.msk.mxu0 %vm443_vm7, %v437_v48 }
 0x10f   : > { %2078 = vmatpush1.msk.msra.mxu0 %vm443_vm7, %v436_v49 }
 0x110   : > { %v592_v51 = vpop.permute.xlu0 %591  ;;  %2079 = vmatmul.mubr.msk.f32.vlgmr.msra.gmra.mrb[0].mxu0 %vm439_vm8, %v2076_v50  ;;  %v434_v52 = vpop.permute.xlu1 %433 }
 0x111   : > { %v438_v53 = vsel %vm435_vm6, %v432_v44, %v434_v52  ;;  %676 = vmatprep.mubr.f32.mxu0 %v2259_v30  ;;  %v600_v58 = vsel %vm599_vm9, %v592_v51, %v594_v46 }
 0x112   : > { %2150 = vmatpush3.msk.msra.mxu1 %vm443_vm7, %v438_v53 }
 0x113   : > { %2152 = vmatmul.mubr.msk.f32.vlgmr.msra.gmra.mrb[0].mxu1 %vm439_vm8, %v2076_v50  ;;  %2154 = vmatprep.subr.mxu1 %v2259_v30 }
 0x114   : > { %v758_v54 = vpop.permute.xlu0 %757  ;;  %v596_v55 = vpop.permute.xlu1 %595  ;;  %2156 = vmatprep.mubr.msk.f32.mxu1 %vm2260_vm3, %v2259_v30 }
 0x115   : > { %v601_v56 = vsel %vm599_vm9, %v594_v46, %v596_v55 }
 0x116   : > { %2082 = vmatprep.subr.msk.mxu0 %vm443_vm7, %v601_v56 }
 0x117   : > { %2083 = vmatpush1.msk.msra.mxu0 %vm443_vm7, %v600_v58 }
 0x118   : > { %v756_v59 = vpop.permute.xlu0 %755  ;;  %2084 = vmatmul.mubr.msk.f32.vlgmr.msra.gmra.mrb[0].mxu0 %vm439_vm8, %v420_v57  ;;  %v598_v60 = vpop.permute.xlu1 %597 }
 0x119   : > { %v602_v61 = vsel %vm599_vm9, %v596_v55, %v598_v60  ;;  %840 = vmatprep.mubr.f32.mxu0 %v2259_v30  ;;  %v764_v2 = vsel %vm763_vm10, %v756_v59, %v758_v54 }
 0x11a   : > { %2155 = vmatpush3.msk.msra.mxu1 %vm443_vm7, %v602_v61 }
 0x11b   : > { %2157 = vmatmul.mubr.msk.f32.vlgmr.msra.gmra.mrb[0].mxu1 %vm439_vm8, %v420_v57  ;;  %2159 = vmatprep.subr.mxu1 %v2259_v30 }
 0x11c   : > { %v925_v62 = vpop.permute.xlu0 %924  ;;  %v760_v63 = vpop.permute.xlu1 %759  ;;  %2161 = vmatprep.mubr.msk.f32.mxu1 %vm2260_vm3, %v2259_v30 }
 0x11d   : > { %v765_v0 = vsel %vm763_vm10, %v758_v54, %v760_v63 }
 0x11e   : > { %2088 = vmatprep.subr.msk.mxu0 %vm443_vm7, %v765_v0 }
 0x11f   : > { %2089 = vmatpush1.msk.msra.mxu0 %vm443_vm7, %v764_v2 }
 0x120   : > { %v923_v3 = vpop.permute.xlu0 %922  ;;  %2090 = vmatmul.mubr.msk.f32.vlgmr.msra.gmra.mrb[0].mxu0 %vm439_vm8, %v2087_v1  ;;  %v762_v4 = vpop.permute.xlu1 %761 }
 0x121   : > { %v766_v5 = vsel %vm763_vm10, %v760_v63, %v762_v4  ;;  %1007 = vmatprep.mubr.f32.mxu0 %v2259_v30  ;;  %v931_v11 = vsel %vm930_vm11, %v923_v3, %v925_v62 }
 0x122   : > { %2160 = vmatpush3.msk.msra.mxu1 %vm443_vm7, %v766_v5 }
 0x123   : > { %2162 = vmatmul.mubr.msk.f32.vlgmr.msra.gmra.mrb[0].mxu1 %vm439_vm8, %v2087_v1  ;;  %2164 = vmatprep.subr.mxu1 %v2259_v30 }
 0x124   : > { %v1247_v7 = vpop.permute.xlu0 %1246  ;;  %v927_v8 = vpop.permute.xlu1 %926  ;;  %2166 = vmatprep.mubr.msk.f32.mxu1 %vm2260_vm3, %v2259_v30 }
 0x125   : > { %v932_v9 = vsel %vm930_vm11, %v925_v62, %v927_v8 }
 0x126   : > { %2094 = vmatprep.subr.msk.mxu0 %vm443_vm7, %v932_v9 }
 0x127   : > { %2095 = vmatpush1.msk.msra.mxu0 %vm443_vm7, %v931_v11 }
 0x128   : > { %v1245_v12 = vpop.permute.xlu0 %1244  ;;  %2096 = vmatmul.mubr.msk.f32.vlgmr.msra.gmra.mrb[0].mxu0 %vm439_vm8, %v2093_v10  ;;  %2100 = vmatprep.subr.msk.mxu0 %vm443_vm7, %v2357_v37  ;;  %v929_v13 = vpop.permute.xlu1 %928 }
 0x129   : > { %v933_v15 = vsel %vm930_vm11, %v927_v8, %v929_v13  ;;  %2101 = vmatpush1.msk.msra.mxu0 %vm443_vm7, %v2360_v42  ;;  %1162 = vmatprep.mubr.f32.mxu0 %v2259_v30  ;;  %v1251_v21 = vsel %vm1250_vm12, %v1245_v12, %v1247_v7  ;;  %v1898_v42 = vld [vmem:[%s2531_s5 + $0x1] sm:$0x7] }
 0x12a   : > { %2165 = vmatpush3.msk.msra.mxu1 %vm443_vm7, %v933_v15  ;;  %v1907_v44 = vrot.slane %v1898_v42, %v396_v23  ;;  %v1911_v45 = vrot.slane %v1898_v42, %v400_v14 }
 0x12b   : > { %2167 = vmatmul.mubr.msk.f32.vlgmr.msra.gmra.mrb[0].mxu1 %vm439_vm8, %v2093_v10  ;;  %2169 = vmatprep.subr.mxu1 %v2259_v30 }
 0x12c   : > { %2170 = vmatpush3.msk.msra.mxu1 %vm443_vm7, %v2364_v43  ;;  %v1249_v17 = vpop.permute.xlu1 %1248  ;;  %2171 = vmatprep.mubr.msk.f32.mxu1 %vm2260_vm3, %v2259_v30  ;;  %v1413_v20 = vpop.permute.xlu0 %1412  ;;  %v1903_v43 = vrot.slane %v1898_v42, %v392_v16 }
 0x12d   : > { %v1252_v18 = vsel %vm1250_vm12, %v1247_v7, %v1249_v17  ;;  %2174 = vmatprep.subr.mxu1 %v2259_v30 }
 0x12e   : > { %2106 = vmatprep.subr.msk.mxu0 %vm443_vm7, %v1252_v18 }
 0x130   : > { %2102 = vmatmul.mubr.msk.f32.vlgmr.msra.gmra.mrb[0].mxu0 %vm439_vm8, %v2099_v19  ;;  %v1411_v22 = vpop.permute.xlu1 %1410  ;;  %v1575_v25 = vpop.permute.xlu0 %1574 }
 0x131   : > { %2107 = vmatpush1.msk.msra.mxu0 %vm443_vm7, %v1251_v21  ;;  %v1416_v24 = vsel %vm1414_vm13, %v1411_v22, %v1413_v20  ;;  %1326 = vmatprep.mubr.f32.mxu0 %v2259_v30 }
 0x132   : > { %2112 = vmatprep.subr.msk.mxu0 %vm443_vm7, %v1416_v24 }
 0x133   : > { %2172 = vmatmul.mubr.msk.f32.vlgmr.msra.gmra.mrb[0].mxu1 %vm439_vm8, %v2099_v19 }
 0x134   : > { %2175 = vmatpush3.msk.msra.mxu1 %vm443_vm7, %v1249_v17  ;;  %v1409_v26 = vpop.permute.xlu1 %1408  ;;  %2176 = vmatprep.mubr.msk.f32.mxu1 %vm2260_vm3, %v2259_v30  ;;  %v1573_v32 = vpop.permute.xlu0 %1572 }
 0x135   : > { %2179 = vmatprep.subr.mxu1 %v2259_v30  ;;  %v1415_v28 = vsel %vm1414_vm13, %v1409_v26, %v1411_v22  ;;  %v1579_v35 = vsel %vm1578_vm14, %v1573_v32, %v1575_v25 }
 0x138   : > { %2108 = vmatmul.mubr.msk.f32.vlgmr.msra.gmra.mrb[0].mxu0 %vm439_vm8, %v2105_v27  ;;  %v1577_v29 = vpop.permute.xlu1 %1576  ;;  %v1741_v36 = vpop.permute.xlu0 %1740 }
 0x139   : > { %2113 = vmatpush1.msk.msra.mxu0 %vm443_vm7, %v1415_v28  ;;  %v1580_v31 = vsel %vm1578_vm14, %v1575_v25, %v1577_v29  ;;  %1490 = vmatprep.mubr.f32.mxu0 %v2259_v30 }
 0x13a   : > { %2118 = vmatprep.subr.msk.mxu0 %vm443_vm7, %v1580_v31 }
 0x13b   : > { %2177 = vmatmul.mubr.msk.f32.vlgmr.msra.gmra.mrb[0].mxu1 %vm439_vm8, %v2105_v27 }
 0x13c   : > { %2180 = vmatpush3.msk.msra.mxu1 %vm443_vm7, %v1413_v20  ;;  %2181 = vmatprep.mubr.msk.f32.mxu1 %vm2260_vm3, %v2259_v30  ;;  %v1739_v34 = vpop.permute.xlu1 %1738 }
 0x13d   : > { %2184 = vmatprep.subr.mxu1 %v2259_v30  ;;  %v1744_v37 = vsel %vm1742_vm15, %v1739_v34, %v1741_v36 }
 0x140   : > { %2114 = vmatmul.mubr.msk.f32.vlgmr.msra.gmra.mrb[0].mxu0 %vm439_vm8, %v2111_v33  ;;  %v1737_v38 = vpop.permute.xlu1 %1736 }
 0x141   : > { %2119 = vmatpush1.msk.msra.mxu0 %vm443_vm7, %v1579_v35  ;;  %1654 = vmatprep.mubr.f32.mxu0 %v2259_v30  ;;  %v1743_v40 = vsel %vm1742_vm15, %v1737_v38, %v1739_v34 }
 0x142   : > { %2124 = vmatprep.subr.msk.mxu0 %vm443_vm7, %v1744_v37 }
 0x143   : > { %2182 = vmatmul.mubr.msk.f32.vlgmr.msra.gmra.mrb[0].mxu1 %vm439_vm8, %v2111_v33 }
 0x144   : > { %2185 = vmatpush3.msk.msra.mxu1 %vm443_vm7, %v1577_v29  ;;  %2186 = vmatprep.mubr.msk.f32.mxu1 %vm2260_vm3, %v2259_v30 }
 0x145   : > { %2189 = vmatprep.subr.mxu1 %v2259_v30 }
 0x148   : > { %2120 = vmatmul.mubr.msk.f32.vlgmr.msra.gmra.mrb[0].mxu0 %vm439_vm8, %v2117_v39 }
 0x149   : > { %2125 = vmatpush1.msk.msra.mxu0 %vm443_vm7, %v1743_v40  ;;  %1818 = vmatprep.mubr.f32.mxu0 %v2259_v30 }
 0x14b   : > { %2187 = vmatmul.mubr.msk.f32.vlgmr.msra.gmra.mrb[0].mxu1 %vm439_vm8, %v2117_v39 }
 0x14c   : > { %2190 = vmatpush3.msk.msra.mxu1 %vm443_vm7, %v1741_v36  ;;  %2191 = vmatprep.mubr.msk.f32.mxu1 %vm2260_vm3, %v2259_v30 }
 0x150   : > { %2126 = vmatmul.mubr.msk.f32.vlgmr.msra.gmra.mrb[0].mxu0 %vm439_vm8, %v2123_v41 }
 0x153   : > { %2192 = vmatmul.mubr.msk.f32.vlgmr.msra.gmra.mrb[0].mxu1 %vm439_vm8, %v2123_v41 }
 0x223   : > { %v1820_v30 = vpop.f32.mrb[0].mxu0 }
 0x224   : > { %v1915_v46 = vmul.f32 %v1903_v43, %v1820_v30  ;;  %v1822_v47 = vpop.f32.mrb[1].mxu0 }
 0x225   : > { %v1916_v48 = vmul.f32 %v1907_v44, %v1822_v47 }
 0x226   : > { %v1925_v49 = vmul.f32 %v1915_v46, %v1915_v46  ;;  %1934 = vst [vmem:[%s338_s11 + $0x8] sm:$0xff] %v1915_v46  ;;  %v1891_v50 = vpop.f32.mrb[0].mxu1 }
 0x227   : > { %v1926_v16 = vmul.f32 %v1916_v48, %v1916_v48  ;;  %1935 = vst [vmem:[%s338_s11 + $0x10] sm:$0xff] %v1916_v48  ;;  %v1917_v51 = vmul.f32 %v1911_v45, %v1891_v50  ;;  %v2193_v23 = vpop.f32.mrb[1].mxu1  ;;  %v1918_v52 = vadd.f32 %v1916_v48, %v1915_v46 }
 0x229   : > { %v1920_v53 = vsel %vm1919_vm0, %v1917_v51, 0.0  ;;  %1936 = vst.msk [vmem:[%s338_s11 + $0x18] sm:$0xff] %vm1919_vm0, %v1917_v51  ;;  %v1927_v54 = vmul.f32 %v1917_v51, %v1917_v51  ;;  %v1928_v55 = vadd.f32 %v1926_v16, %v1925_v49 }
 0x22a   : > { %v1921_v56 = vadd.f32 %v1920_v53, %v1918_v52 }
 0x22b   : > { %v1929_v6 = vsel %vm1919_vm0, %v1927_v54, 0.0 }
 0x22c   : > { %1922 = vadd.xlane.f32.xlu0 %v1921_v56  ;;  %v1930_v14 = vadd.f32 %v1929_v6, %v1928_v55 }
 0x22e   : > { %1931 = vadd.xlane.f32.xlu1 %v1930_v14 }
 0x2b9   : > { %v1923_v57 = vpop.xlane.xlu0 %1922 }
 0x2ba   : > { %1924 = vst.msk [vmem:[%s342_s15] sm:$0xff] %vm930_vm11, %v1923_v57 }
 0x2bb   : > { %v1932_v58 = vpop.xlane.xlu1 %1931 }
 0x2bc   : > { %1933 = vst.msk [vmem:[%s346_s18] sm:$0xff] %vm930_vm11, %v1932_v58 }
 0x2bd PF: > { %s19_s27 = sadd.s32 1, %s2255_s27  }
 0x2be   : > { %p16_p4 = scmp.ge.s32.totalorder %s19_s27, 4  }
 0x2c0   :  { %18 = sbr.rel (!%p16_p4) target bundleno = 1 (0x1), region = 109 }

// kernel: block_forward.4
= control target key start
LH: loop header
LB: loop body
LE: loop exit
PB: predicated region body
PF: predicated region fallthrough
CT: control target
= control target key end

     0   :  { %s2118_s18 = smov 0   ;;  %s2308_s0 = inlined_call_operand.vmem [shape: f32[2,4,580], index: 0, kind: input, shape index: {}]   ;;  %s2309_s1 = inlined_call_operand.vmem [shape: f32[9,4,4], index: 1, kind: input, shape index: {}]   ;;  %s2310_s2 = inlined_call_operand.vmem [shape: f32[1,580], index: 2, kind: input, shape index: {}]   ;;  %s2311_s3 = inlined_call_operand.vmem [shape: f32[2,4,580], index: 3, kind: output, shape index: {0}]   ;;  %s2312_s4 = inlined_call_operand.vmem [shape: f32[2,4,1], index: 4, kind: output, shape index: {1}]   ;;  %s2313_s5 = inlined_call_operand.vmem [shape: f32[2,4,1], index: 5, kind: output, shape index: {2}]  }
   0x1 LB: > { %s1890_s19 = sadd.s32 4294967295, %s2076_s18   ;;  %p1894_p0 = scmp.ge.s32.totalorder %s2076_s18, 1  ;;  %s2076_s18 = sphi %s2118_s18, %s16_s18  }
   0x2   : > { %p192_p1 = scmp.lt.s32.totalorder %s2076_s18, 3 }
   0x4   : > { %p193_p2 = pnand %p1894_p0, %p192_p1 }
   0x5   : > { %p228_p3 = scmp.lt.s32.totalorder (!%p193_p2), %s1890_s19, 1  ;;  %v2078_v0 = vmov (!%p193_p2), 0.0   ;;  %vm2079_vm0 = vmmov (!%p193_p2), 0   ;;  %s2080_s24 = smov (!%p193_p2), 18   ;;  %vm263_vm1 = vcmask (!%p193_p2), 146432   ;;  %vm271_vm2 = vcmask (!%p193_p2), 1043456  }
   0x6   : > { %196 = sbr.rel (%p193_p2) target bundleno = 571 (0x23b), region = 32  ;;  %1972 = vmatprep.subr.mxu1 (!%p193_p2), %v2078_v0  ;;  %342 = vmatprep.mubr.f32.mxu0 (!%p193_p2), %v2078_v0  ;;  %s2081_s25 = smov (!%p193_p2), 19   ;;  %v1899_v9 = vld [vmem:[%s2309_s1 + $0x4] sm:$0xf] (!%p193_p2)  ;;  %vm267_vm3 = vcmask (!%p193_p2), 31744   ;;  %vm427_vm4 = vcmask (!%p193_p2), 154624   ;;  %v1728_v62 = vlaneseq (!%p193_p2) }
   0x7   : > { %1974 = vmatprep.mubr.msk.f32.mxu1 (!%p193_p2), %vm2079_vm0, %v2078_v0  ;;  %s2082_s26 = smov (!%p193_p2), 17   ;;  %s2083_s27 = smov (!%p193_p2), 1   ;;  %v248_v19 = vld [vmem:[%s2309_s1] sm:$0xf] (!%p193_p2)  ;;  %vm591_vm5 = vcmask (!%p193_p2), 138240   ;;  %vm758_vm6 = vcmask (!%p193_p2), 7168  }
   0x8   : > { %s2084_s28 = smov (!%p193_p2), 127   ;;  %s2085_s29 = smov (!%p193_p2), 111   ;;  %v1910_v27 = vld [vmem:[%s2309_s1 + $0x8] sm:$0xf] (!%p193_p2)  ;;  %v1916_v35 = vld [vmem:[%s2309_s1 + $0xc] sm:$0xf] (!%p193_p2) }
   0x9   : > { %s2086_s30 = smov (!%p193_p2), 110   ;;  %s2087_s6 = smov (!%p193_p2), 109   ;;  %vm1078_vm7 = vcmask (!%p193_p2), 1039360   ;;  %v1922_v41 = vld [vmem:[%s2309_s1 + $0x10] sm:$0xf] (!%p193_p2)  ;;  %vm1242_vm8 = vcmask (!%p193_p2), 908288  }
   0xa   : > { %v1928_v47 = vld [vmem:[%s2309_s1 + $0x14] sm:$0xf] (!%p193_p2)  ;;  %vm1406_vm9 = vcmask (!%p193_p2), 900096   ;;  %v1934_v53 = vld [vmem:[%s2309_s1 + $0x18] sm:$0xf] (!%p193_p2)  ;;  %vm1570_vm10 = vcmask (!%p193_p2), 891904  }
   0xb   : > { %v1940_v59 = vld [vmem:[%s2309_s1 + $0x1c] sm:$0xf] (!%p193_p2)  ;;  %v1946_v61 = vld [vmem:[%s2309_s1 + $0x20] sm:$0xf] (!%p193_p2)  ;;  %v1729_v63 = vshrl.u32 (!%p193_p2), %v1728_v62, 7  ;;  %vm1749_vm11 = vcmask (!%p193_p2), 551936  }
   0xc   : > { %vm1754_vm12 = vcmask (!%p193_p2), 3072  }
   0xd   : > { %s2315_s19 = smov (!%p228_p3, %s1890_s19), 1 }
   0xe   : > { %s2049_s20 = smul.u32 20, %s2315_s19 }
  0x10   : > { %s232_s23 = scalar_lea.vmem %s2308_s0, %s2049_s20  ;;  %s237_s7 = scalar_lea.vmem %s2311_s3, %s2049_s20 }
  0x11   : > { %v246_v1 = vld [vmem:[%s232_s23] sm:$0xff]  ;;  %v2138_v2 = vld [vmem:[%s232_s23 + $0x8] sm:$0xff]  ;;  %s1897_s20 = sshll.u32 %s2315_s19, 2 }
  0x12   : > { %v2142_v3 = vcombine.high %v2138_v2, %v2138_v2  ;;  %255 = vrot.lane.b32.xlu1 %v246_v1, %s2080_s24  ;;  %v2144_v4 = vcombine.high %v246_v1, %v246_v1  ;;  %s241_s10 = scalar_lea.vmem %s2312_s4, %s1897_s20  ;;  %s245_s13 = scalar_lea.vmem %s2313_s5, %s1897_s20 }
  0x14   : > { %257 = vrot.lane.b32.xlu0 %v2144_v4, %s2080_s24 }
  0x16   : > { %261 = vrot.lane.b32.xlu1 %v2142_v3, %s2080_s24 }
  0x18   : > { %259 = vrot.lane.b32.xlu0 %v2138_v2, %s2080_s24 }
  0x1a   : > { %423 = vrot.lane.b32.xlu1 %v2138_v2, %s2081_s25 }
  0x1c   : > { %421 = vrot.lane.b32.xlu0 %v2144_v4, %s2081_s25 }
  0x1e   : > { %425 = vrot.lane.b32.xlu1 %v2142_v3, %s2081_s25 }
  0x20   : > { %419 = vrot.lane.b32.xlu0 %v246_v1, %s2081_s25 }
  0x22   : > { %587 = vrot.lane.b32.xlu1 %v2138_v2, %s2082_s26 }
  0x24   : > { %585 = vrot.lane.b32.xlu0 %v2144_v4, %s2082_s26 }
  0x26   : > { %589 = vrot.lane.b32.xlu1 %v2142_v3, %s2082_s26 }
  0x28   : > { %583 = vrot.lane.b32.xlu0 %v246_v1, %s2082_s26 }
  0x2a   : > { %754 = vrot.lane.b32.xlu1 %v2138_v2, %s2083_s27 }
  0x2c   : > { %752 = vrot.lane.b32.xlu0 %v2144_v4, %s2083_s27 }
  0x2e   : > { %756 = vrot.lane.b32.xlu1 %v2142_v3, %s2083_s27 }
  0x30   : > { %750 = vrot.lane.b32.xlu0 %v246_v1, %s2083_s27  ;;  %v1738_v1 = vsub.s32 2, %v1729_v63 }
  0x32   : > { %1076 = vrot.lane.b32.xlu1 %v2142_v3, %s2084_s28 }
  0x34   : > { %1074 = vrot.lane.b32.xlu0 %v2138_v2, %s2084_s28 }
  0x36   : > { %1238 = vrot.lane.b32.xlu1 %v2138_v2, %s2085_s29 }
  0x38   : > { %1072 = vrot.lane.b32.xlu0 %v2144_v4, %s2084_s28 }
  0x3a   : > { %1236 = vrot.lane.b32.xlu1 %v2144_v4, %s2085_s29 }
  0x3c   : > { %1240 = vrot.lane.b32.xlu0 %v2142_v3, %s2085_s29 }
  0x3e   : > { %1404 = vrot.lane.b32.xlu1 %v2142_v3, %s2086_s30 }
  0x40   : > { %1402 = vrot.lane.b32.xlu0 %v2138_v2, %s2086_s30 }
  0x42   : > { %1566 = vrot.lane.b32.xlu1 %v2138_v2, %s2087_s6 }
  0x44   : > { %1400 = vrot.lane.b32.xlu0 %v2144_v4, %s2086_s30 }
  0x46   : > { %1564 = vrot.lane.b32.xlu1 %v2144_v4, %s2087_s6 }
  0x48   : > { %1568 = vrot.lane.b32.xlu0 %v2142_v3, %s2087_s6 }
  0x84   : > { %v256_v5 = vpop.permute.xlu1 %255 }
  0x86   : > { %v258_v6 = vpop.permute.xlu0 %257 }
  0x87   : > { %v264_v13 = vsel %vm263_vm1, %v256_v5, %v258_v6 }
  0x88   : > { %v262_v7 = vpop.permute.xlu1 %261 }
  0x8a   : > { %v260_v8 = vpop.permute.xlu0 %259 }
  0x8b   : > { %v265_v10 = vsel %vm263_vm1, %v258_v6, %v260_v8  ;;  %v266_v11 = vsel %vm263_vm1, %v260_v8, %v262_v7 }
  0x8c   : > { %1900 = vmatprep.subr.msk.mxu0 %vm271_vm2, %v265_v10  ;;  %1973 = vmatpush3.msk.msra.mxu1 %vm271_vm2, %v266_v11  ;;  %v424_v12 = vpop.permute.xlu1 %423 }
  0x8d   : > { %1901 = vmatpush1.msk.msra.mxu0 %vm271_vm2, %v264_v13  ;;  %1975 = vmatmul.mubr.msk.f32.vlgmr.msra.gmra.mrb[0].mxu1 %vm267_vm3, %v1899_v9 }
  0x8e   : > { %1902 = vmatmul.mubr.msk.f32.vlgmr.msra.gmra.mrb[0].mxu0 %vm267_vm3, %v1899_v9  ;;  %v422_v14 = vpop.permute.xlu0 %421  ;;  %1977 = vmatprep.subr.mxu1 %v2078_v0 }
  0x8f   : > { %v429_v15 = vsel %vm427_vm4, %v422_v14, %v424_v12  ;;  %1979 = vmatprep.mubr.msk.f32.mxu1 %vm2079_vm0, %v2078_v0  ;;  %504 = vmatprep.mubr.f32.mxu0 %v2078_v0 }
  0x90   : > { %1905 = vmatprep.subr.msk.mxu0 %vm271_vm2, %v429_v15  ;;  %v426_v16 = vpop.permute.xlu1 %425 }
  0x91   : > { %v430_v17 = vsel %vm427_vm4, %v424_v12, %v426_v16 }
  0x92   : > { %v420_v18 = vpop.permute.xlu0 %419  ;;  %1978 = vmatpush3.msk.msra.mxu1 %vm271_vm2, %v430_v17 }
  0x93   : > { %v428_v20 = vsel %vm427_vm4, %v420_v18, %v422_v14  ;;  %1982 = vmatprep.subr.mxu1 %v2078_v0 }
  0x94   : > { %1906 = vmatpush1.msk.msra.mxu0 %vm271_vm2, %v428_v20  ;;  %v588_v21 = vpop.permute.xlu1 %587 }
  0x95   : > { %1980 = vmatmul.mubr.msk.f32.vlgmr.msra.gmra.mrb[0].mxu1 %vm267_vm3, %v248_v19 }
  0x96   : > { %1907 = vmatmul.mubr.msk.f32.vlgmr.msra.gmra.mrb[0].mxu0 %vm267_vm3, %v248_v19  ;;  %v586_v22 = vpop.permute.xlu0 %585  ;;  %1984 = vmatprep.mubr.msk.f32.mxu1 %vm2079_vm0, %v2078_v0 }
  0x97   : > { %v593_v23 = vsel %vm591_vm5, %v586_v22, %v588_v21  ;;  %668 = vmatprep.mubr.f32.mxu0 %v2078_v0 }
  0x98   : > { %1911 = vmatprep.subr.msk.mxu0 %vm271_vm2, %v593_v23  ;;  %v590_v24 = vpop.permute.xlu1 %589 }
  0x99   : > { %v594_v25 = vsel %vm591_vm5, %v588_v21, %v590_v24 }
  0x9a   : > { %v584_v26 = vpop.permute.xlu0 %583  ;;  %1983 = vmatpush3.msk.msra.mxu1 %vm271_vm2, %v594_v25 }
  0x9b   : > { %v592_v28 = vsel %vm591_vm5, %v584_v26, %v586_v22  ;;  %1987 = vmatprep.subr.mxu1 %v2078_v0 }
  0x9c   : > { %1912 = vmatpush1.msk.msra.mxu0 %vm271_vm2, %v592_v28  ;;  %v755_v29 = vpop.permute.xlu1 %754 }
  0x9d   : > { %1985 = vmatmul.mubr.msk.f32.vlgmr.msra.gmra.mrb[0].mxu1 %vm267_vm3, %v1910_v27 }
  0x9e   : > { %1913 = vmatmul.mubr.msk.f32.vlgmr.msra.gmra.mrb[0].mxu0 %vm267_vm3, %v1910_v27  ;;  %v753_v30 = vpop.permute.xlu0 %752  ;;  %1989 = vmatprep.mubr.msk.f32.mxu1 %vm2079_vm0, %v2078_v0 }
  0x9f   : > { %v760_v31 = vsel %vm758_vm6, %v753_v30, %v755_v29  ;;  %835 = vmatprep.mubr.f32.mxu0 %v2078_v0 }
  0xa0   : > { %1917 = vmatprep.subr.msk.mxu0 %vm271_vm2, %v760_v31  ;;  %v757_v32 = vpop.permute.xlu1 %756 }
  0xa1   : > { %v761_v33 = vsel %vm758_vm6, %v755_v29, %v757_v32 }
  0xa2   : > { %v751_v34 = vpop.permute.xlu0 %750  ;;  %1988 = vmatpush3.msk.msra.mxu1 %vm271_vm2, %v761_v33 }
  0xa3   : > { %v759_v36 = vsel %vm758_vm6, %v751_v34, %v753_v30  ;;  %1992 = vmatprep.subr.mxu1 %v2078_v0 }
  0xa4   : > { %1918 = vmatpush1.msk.msra.mxu0 %vm271_vm2, %v759_v36  ;;  %v1077_v37 = vpop.permute.xlu1 %1076 }
  0xa5   : > { %1990 = vmatmul.mubr.msk.f32.vlgmr.msra.gmra.mrb[0].mxu1 %vm267_vm3, %v1916_v35  ;;  %1923 = vmatprep.subr.msk.mxu0 %vm271_vm2, %v2138_v2  ;;  %v1726_v2 = vld [vmem:[%s2310_s2 + $0x1] sm:$0x7] }
  0xa6   : > { %1919 = vmatmul.mubr.msk.f32.vlgmr.msra.gmra.mrb[0].mxu0 %vm267_vm3, %v1916_v35  ;;  %v1075_v38 = vpop.permute.xlu0 %1074  ;;  %1993 = vmatpush3.msk.msra.mxu1 %vm271_vm2, %v2142_v3  ;;  %v1730_v3 = vsub.s32 0, %v1729_v63  ;;  %v1739_v5 = vrot.slane %v1726_v2, %v1738_v1 }
  0xa7   : > { %1924 = vmatpush1.msk.msra.mxu0 %vm271_vm2, %v2144_v4  ;;  %1994 = vmatprep.mubr.msk.f32.mxu1 %vm2079_vm0, %v2078_v0  ;;  %v1080_v39 = vsel %vm1078_vm7, %v1075_v38, %v1077_v37  ;;  %v1734_v4 = vsub.s32 1, %v1729_v63 }
  0xa8   : > { %990 = vmatprep.mubr.f32.mxu0 %v2078_v0  ;;  %1929 = vmatprep.subr.msk.mxu0 %vm271_vm2, %v1080_v39  ;;  %v1239_v40 = vpop.permute.xlu1 %1238  ;;  %v1731_v6 = vrot.slane %v1726_v2, %v1730_v3 }
  0xa9   : > { %1997 = vmatprep.subr.mxu1 %v2078_v0 }
  0xaa   : > { %v1073_v42 = vpop.permute.xlu0 %1072 }
  0xab   : > { %v1079_v43 = vsel %vm1078_vm7, %v1073_v42, %v1075_v38 }
  0xac   : > { %v1237_v45 = vpop.permute.xlu1 %1236 }
  0xad   : > { %1995 = vmatmul.mubr.msk.f32.vlgmr.msra.gmra.mrb[0].mxu1 %vm267_vm3, %v1922_v41  ;;  %v1243_v50 = vsel %vm1242_vm8, %v1237_v45, %v1239_v40 }
  0xae   : > { %1925 = vmatmul.mubr.msk.f32.vlgmr.msra.gmra.mrb[0].mxu0 %vm267_vm3, %v1922_v41  ;;  %1998 = vmatpush3.msk.msra.mxu1 %vm271_vm2, %v1077_v37  ;;  %v1241_v44 = vpop.permute.xlu0 %1240 }
  0xaf   : > { %1930 = vmatpush1.msk.msra.mxu0 %vm271_vm2, %v1079_v43  ;;  %1999 = vmatprep.mubr.msk.f32.mxu1 %vm2079_vm0, %v2078_v0  ;;  %v1244_v46 = vsel %vm1242_vm8, %v1239_v40, %v1241_v44 }
  0xb0   : > { %1154 = vmatprep.mubr.f32.mxu0 %v2078_v0  ;;  %1935 = vmatprep.subr.msk.mxu0 %vm271_vm2, %v1244_v46  ;;  %v1405_v49 = vpop.permute.xlu1 %1404 }
  0xb1   : > { %2002 = vmatprep.subr.mxu1 %v2078_v0 }
  0xb2   : > { %v1403_v48 = vpop.permute.xlu0 %1402 }
  0xb3   : > { %v1408_v51 = vsel %vm1406_vm9, %v1403_v48, %v1405_v49 }
  0xb4   : > { %v1567_v55 = vpop.permute.xlu1 %1566 }
  0xb5   : > { %2000 = vmatmul.mubr.msk.f32.vlgmr.msra.gmra.mrb[0].mxu1 %vm267_vm3, %v1928_v47 }
  0xb6   : > { %1931 = vmatmul.mubr.msk.f32.vlgmr.msra.gmra.mrb[0].mxu0 %vm267_vm3, %v1928_v47  ;;  %2003 = vmatpush3.msk.msra.mxu1 %vm271_vm2, %v1241_v44  ;;  %v1401_v52 = vpop.permute.xlu0 %1400 }
  0xb7   : > { %1936 = vmatpush1.msk.msra.mxu0 %vm271_vm2, %v1243_v50  ;;  %2004 = vmatprep.mubr.msk.f32.mxu1 %vm2079_vm0, %v2078_v0  ;;  %v1407_v56 = vsel %vm1406_vm9, %v1401_v52, %v1403_v48 }
  0xb8   : > { %1318 = vmatprep.mubr.f32.mxu0 %v2078_v0  ;;  %1941 = vmatprep.subr.msk.mxu0 %vm271_vm2, %v1408_v51  ;;  %v1565_v58 = vpop.permute.xlu1 %1564 }
  0xb9   : > { %2007 = vmatprep.subr.mxu1 %v2078_v0  ;;  %v1571_v60 = vsel %vm1570_vm10, %v1565_v58, %v1567_v55 }
  0xba   : > { %v1569_v54 = vpop.permute.xlu0 %1568 }
  0xbb   : > { %v1572_v57 = vsel %vm1570_vm10, %v1567_v55, %v1569_v54 }
  0xbd   : > { %2005 = vmatmul.mubr.msk.f32.vlgmr.msra.gmra.mrb[0].mxu1 %vm267_vm3, %v1934_v53 }
  0xbe   : > { %1937 = vmatmul.mubr.msk.f32.vlgmr.msra.gmra.mrb[0].mxu0 %vm267_vm3, %v1934_v53  ;;  %2008 = vmatpush3.msk.msra.mxu1 %vm271_vm2, %v1405_v49 }
  0xbf   : > { %1942 = vmatpush1.msk.msra.mxu0 %vm271_vm2, %v1407_v56  ;;  %2009 = vmatprep.mubr.msk.f32.mxu1 %vm2079_vm0, %v2078_v0 }
  0xc0   : > { %1482 = vmatprep.mubr.f32.mxu0 %v2078_v0  ;;  %1947 = vmatprep.subr.msk.mxu0 %vm271_vm2, %v1572_v57 }
  0xc1   : > { %2012 = vmatprep.subr.mxu1 %v2078_v0 }
  0xc5   : > { %2010 = vmatmul.mubr.msk.f32.vlgmr.msra.gmra.mrb[0].mxu1 %vm267_vm3, %v1940_v59 }
  0xc6   : > { %1943 = vmatmul.mubr.msk.f32.vlgmr.msra.gmra.mrb[0].mxu0 %vm267_vm3, %v1940_v59  ;;  %2013 = vmatpush3.msk.msra.mxu1 %vm271_vm2, %v1569_v54 }
  0xc7   : > { %1948 = vmatpush1.msk.msra.mxu0 %vm271_vm2, %v1571_v60  ;;  %2014 = vmatprep.mubr.msk.f32.mxu1 %vm2079_vm0, %v2078_v0 }
  0xc8   : > { %1646 = vmatprep.mubr.f32.mxu0 %v2078_v0  ;;  %v1735_v0 = vrot.slane %v1726_v2, %v1734_v4 }
  0xcd   : > { %2015 = vmatmul.mubr.msk.f32.vlgmr.msra.gmra.mrb[0].mxu1 %vm267_vm3, %v1946_v61 }
  0xce   : > { %1949 = vmatmul.mubr.msk.f32.vlgmr.msra.gmra.mrb[0].mxu0 %vm267_vm3, %v1946_v61 }
 0x1a0   : > { %v1719_v7 = vpop.f32.mrb[0].mxu1 }
 0x1a1   : > { %v1745_v8 = vmul.f32 %v1739_v5, %v1719_v7  ;;  %v1648_v9 = vpop.f32.mrb[0].mxu0  ;;  %v2016_v10 = vpop.f32.mrb[1].mxu1 }
 0x1a2   : > { %v1743_v11 = vmul.f32 %v1731_v6, %v1648_v9  ;;  %v1650_v12 = vpop.f32.mrb[1].mxu0 }
 0x1a3   : > { %v1744_v13 = vmul.f32 %v1735_v0, %v1650_v12  ;;  %1772 = vst.msk [vmem:[%s237_s7 + $0xc] sm:$0xf] %vm1749_vm11, %v1745_v8  ;;  %v1758_v19 = vmul.f32 %v1745_v8, %v1745_v8  ;;  %v1750_v22 = vsel %vm1749_vm11, %v1745_v8, 0.0 }
 0x1a4   : > { %v1756_v14 = vmul.f32 %v1743_v11, %v1743_v11  ;;  %v1746_v15 = vsel %vm271_vm2, %v1743_v11, 0.0 }
 0x1a5   : > { %v1757_v16 = vmul.f32 %v1744_v13, %v1744_v13  ;;  %v1769_v17 = vcombine.low %v1743_v11, %v1744_v13  ;;  %v1747_v18 = vsel %vm271_vm2, %v1744_v13, 0.0  ;;  %v1762_v26 = vsel %vm1749_vm11, %v1758_v19, 0.0 }
 0x1a6   : > { %v1748_v20 = vadd.f32 %v1747_v18, %v1746_v15  ;;  %v1759_v21 = vsel %vm271_vm2, %v1756_v14, 0.0 }
 0x1a7   : > { %1771 = vst [vmem:[%s237_s7 + $0x4] sm:$0xff] %v1769_v17  ;;  %v1760_v23 = vsel %vm271_vm2, %v1757_v16, 0.0 }
 0x1a8   : > { %v1751_v24 = vadd.f32 %v1750_v22, %v1748_v20  ;;  %v1761_v25 = vadd.f32 %v1760_v23, %v1759_v21 }
 0x1aa   : > { %1752 = vadd.xlane.f32.xlu0 %v1751_v24  ;;  %v1763_v27 = vadd.f32 %v1762_v26, %v1761_v25 }
 0x1ac   : > { %1764 = vadd.xlane.f32.xlu1 %v1763_v27 }
 0x237   : > { %v1753_v28 = vpop.xlane.xlu0 %1752 }
 0x238   : > { %1755 = vst.msk [vmem:[%s241_s10] sm:$0xf] %vm1754_vm12, %v1753_v28 }
 0x239   : > { %v1765_v29 = vpop.xlane.xlu1 %1764 }
 0x23a   : > { %1766 = vst.msk [vmem:[%s245_s13] sm:$0xf] %vm1754_vm12, %v1765_v29 }
 0x23b PF: > { %s16_s18 = sadd.s32 1, %s2076_s18  }
 0x23c   : > { %p13_p4 = scmp.ge.s32.totalorder %s16_s18, 4  }
 0x23e   :  { %15 = sbr.rel (!%p13_p4) target bundleno = 1 (0x1), region = 94 }

</bundles_post_ra>
